<compile_context>
chip_gen: v7x
topology: tpu7x:2x2x1
jax: 0.10.0
libtpu: 0.0.40
codegen_flags: <defaults>
</compile_context>

<pallas_src>
import math

import jax
import jax.numpy as jnp
from jax import lax
from jax.experimental import pallas as pl
from jax.experimental.pallas import tpu as pltpu


# ----------------------------------------------------------------------------
# Pallas kernel: one batch tile, both siamese branches stacked, weights resident.
# ----------------------------------------------------------------------------
def siamese_kernel(x1_ref, x2_ref,
                   w0_ref, b0_ref,
                   w1_ref, b1_ref,
                   w2_ref, b2_ref,
                   wp_ref, bp_ref,
                   out_ref):
    TB, N, D = x1_ref.shape
    H1 = w1_ref.shape[2]
    cdt = w0_ref.dtype          # matmul operand dtype (f32 or bf16)
    f32 = jnp.float32

    # --- encoder: layer0 (per instance) + flatten + layer1, fused -----------
    # h1[b, o] = sum_n relu(x[b, n, :] @ W0 + b0) @ W1r[n]  (+ b1, relu later)
    # This contracts the (N, H0) flatten dims directly and avoids the
    # lane-crossing (2TB*N, H0) -> (2TB, N*H0) relayout.
    h1 = jnp.zeros((2 * TB, H1), f32)
    for n in range(N):                                   # static unroll, N small
        xn = jnp.concatenate([x1_ref[:, n, :], x2_ref[:, n, :]], axis=0)
        h0n = jnp.dot(xn, w0_ref[...], preferred_element_type=f32) + b0_ref[...]
        h0n = jnp.maximum(h0n, 0.0)
        h1 = h1 + jnp.dot(h0n.astype(cdt), w1_ref[n],
                          preferred_element_type=f32)
    h1 = jnp.maximum(h1 + b1_ref[...], 0.0)

    # --- encoder: final linear -> embedding (zero-padded to E_pad lanes) ----
    e = jnp.dot(h1.astype(cdt), w2_ref[...],
                preferred_element_type=f32) + b2_ref[...]        # (2TB, E_pad)

    # --- siamese distance + predictor ---------------------------------------
    dis = jnp.abs(e[:TB, :] - e[TB:, :])                          # (TB, E_pad)
    # (1, E_pad) . (TB, E_pad)^T -> (1, TB): lane-dense output row.
    out = lax.dot_general(wp_ref[...], dis,
                          (((1,), (1,)), ((), ())),
                          preferred_element_type=f32)
    out_ref[...] = out + bp_ref[...]


# ----------------------------------------------------------------------------
# Size bookkeeping identical to SiameseNetwork.__init__ (default layer counts).
# ----------------------------------------------------------------------------
def _get_coefs(coef, imputation=0.75, stage="encoder"):
    if stage == "encoder":
        return (1.0 + 1.0 * coef, coef * imputation)
    return (1.0 + 3.0 * coef, coef * imputation)


def siamese_dims(n_instance, n_dim, hidden_dim=50,
                 n_layer_before_flatten=1, n_layer_after_flatten=1):
    """Returns list of (in, out) for encoder linears, plus embed_dim."""
    dims = []
    hidden_current, hidden_next, coef = n_dim, hidden_dim, 1.0
    for _ in range(n_layer_before_flatten):
        dims.append((hidden_current, hidden_next))
        div, coef = _get_coefs(coef, stage="encoder")
        hidden_current, hidden_next = hidden_next, int(hidden_next / div)
    hidden_current = n_instance * hidden_current
    div, coef = _get_coefs(1.0, stage="decoder")
    hidden_next = int(hidden_current / div)
    for _ in range(n_layer_after_flatten):
        dims.append((hidden_current, hidden_next))
        div, coef = _get_coefs(coef, stage="decoder")
        hidden_current, hidden_next = hidden_next, int(hidden_next / div)
    dims.append((hidden_current, hidden_next))  # final encoder linear
    return dims, hidden_next                    # embed_dim = hidden_next


def init_params(key, dims, embed_dim):
    """PyTorch-style uniform init; weights stored transposed as (in, out)."""
    params = []
    all_dims = dims + [(embed_dim, 1)]          # + predictor
    keys = jax.random.split(key, 2 * len(all_dims))
    for i, (fan_in, fan_out) in enumerate(all_dims):
        bound = 1.0 / math.sqrt(fan_in)
        w = jax.random.uniform(keys[2 * i], (fan_in, fan_out),
                               minval=-bound, maxval=bound, dtype=jnp.float32)
        b = jax.random.uniform(keys[2 * i + 1], (1, fan_out),
                               minval=-bound, maxval=bound, dtype=jnp.float32)
        params.append((w, b))
    return params


def _round_up(x, m):
    return ((x + m - 1) // m) * m


# ----------------------------------------------------------------------------
# Wrapper: parameter layout plumbing + batch-tiled pallas_call.
# ----------------------------------------------------------------------------
def siamese_forward(x1, x2, params, *, block_b=128, compute_dtype=jnp.float32):
    assert block_b % 128 == 0, "block_b must be a multiple of 128 (lane-dense out)"
    B, N, D = x1.shape
    (w0, b0), (w1, b1), (w2, b2), (wp, bp) = params
    H0 = w0.shape[1]
    H1 = w1.shape[1]
    E = w2.shape[1]
    f32 = jnp.float32

    # -- parameter prep (one-time layout plumbing) ---------------------------
    # w1 reshaped so the kernel contracts per instance: w1r[n, h, o] == w1[n*H0+h, o]
    w1r = w1.reshape(N, H0, H1)
    # zero-pad the odd embedding dim to a full 128-lane multiple (exact zeros,
    # so |e1-e2| and the predictor contraction are unaffected).
    E_pad = _round_up(E, 128)
    w2p = jnp.zeros((H1, E_pad), f32).at[:, :E].set(w2.astype(f32))
    b2p = jnp.zeros((1, E_pad), f32).at[:, :E].set(b2.astype(f32))
    wpp = jnp.zeros((1, E_pad), f32).at[:, :E].set(wp.reshape(1, E).astype(f32))
    bpp = bp.reshape(1, 1).astype(f32)

    # matmul operands in compute_dtype (bf16 recommended on v6e/v7x); biases,
    # accumulation and the predictor stay f32.
    cdt = compute_dtype
    x1c = x1.astype(cdt)
    x2c = x2.astype(cdt)
    w0c = w0.astype(cdt)
    w1rc = w1r.astype(cdt)
    w2pc = w2p.astype(cdt)
    b0f = b0.astype(f32)
    b1f = b1.astype(f32)

    # -- batch tiling ---------------------------------------------------------
    if B >= block_b:
        TB = block_b                     # multiple of 128 -> unmasked out store
    else:
        TB = _round_up(B, 8)             # single, sublane-aligned tile
    B_pad = _round_up(B, TB)
    if B_pad != B:
        pad = ((0, B_pad - B), (0, 0), (0, 0))
        x1c = jnp.pad(x1c, pad)
        x2c = jnp.pad(x2c, pad)
    grid = (B_pad // TB,)

    x_spec = pl.BlockSpec((TB, N, D), lambda i: (i, 0, 0))
    const2 = lambda i: (0, 0)            # weights stay VMEM-resident
    const3 = lambda i: (0, 0, 0)
    in_specs = [
        x_spec, x_spec,
        pl.BlockSpec((D, H0), const2),
        pl.BlockSpec((1, H0), const2),
        pl.BlockSpec((N, H0, H1), const3),
        pl.BlockSpec((1, H1), const2),
        pl.BlockSpec((H1, E_pad), const2),
        pl.BlockSpec((1, E_pad), const2),
        pl.BlockSpec((1, E_pad), const2),
        pl.BlockSpec((1, 1), const2),
    ]
    out_specs = pl.BlockSpec((1, TB), lambda i: (0, i))

    itemsize = jnp.dtype(cdt).itemsize
    flops = B_pad * (4 * (N * D * H0 + N * H0 * H1 + H1 * E_pad) + 2 * E_pad)
    bytes_accessed = (2 * B_pad * N * D * itemsize                      # x1, x2
                      + (D * H0 + N * H0 * H1 + H1 * E_pad) * itemsize  # weights
                      + (H0 + H1 + 2 * E_pad + 1) * 4                   # biases/wp
                      + B_pad * 4)                                      # output
    cost = pl.CostEstimate(flops=flops, transcendentals=0,
                           bytes_accessed=bytes_accessed)

    out2d = pl.pallas_call(
        siamese_kernel,
        out_shape=jax.ShapeDtypeStruct((1, B_pad), f32),
        grid_spec=pltpu.PrefetchScalarGridSpec(
            num_scalar_prefetch=0,
            grid=grid,
            in_specs=in_specs,
            out_specs=out_specs,
        ),
        compiler_params=pltpu.CompilerParams(
            dimension_semantics=("parallel",)),
        cost_estimate=cost,
    )(x1c, x2c, w0c, b0f, w1rc, b1f, w2pc, b2p, wpp, bpp)

    # (1, B_pad) lane-dense row -> (B,)  (matches torch output.flatten())
    return out2d.reshape(-1)[:B]


# ----------------------------------------------------------------------------
# Pure-JAX reference (exact PyTorch-module math, f32) for correctness checks.
# ----------------------------------------------------------------------------
def siamese_forward_ref(x1, x2, params):
    (w0, b0), (w1, b1), (w2, b2), (wp, bp) = params

    def encode(x):
        B, N, D = x.shape
        h = jnp.maximum(x.reshape(B * N, D) @ w0 + b0, 0.0)
        h = h.reshape(B, -1)                        # nn.Flatten
        h = jnp.maximum(h @ w1 + b1, 0.0)
        return h @ w2 + b2

    dis = jnp.abs(encode(x1) - encode(x2))
    return (dis @ wp + bp).reshape(-1)


if __name__ == "__main__":
    # Small, forward-consistent shapes: input_dim = (n_instance=8, n_dim=32)
    batch, n_instance, n_dim, hidden_dim = 2, 8, 32, 32

    dims, embed_dim = siamese_dims(n_instance, n_dim, hidden_dim,
                                   n_layer_before_flatten=1,
                                   n_layer_after_flatten=1)
    # dims = [(32, 32), (256, 64), (64, 19)], embed_dim = 19

    key = jax.random.PRNGKey(0)
    kx1, kx2, kp, kb = jax.random.split(key, 4)
    x1 = jax.random.normal(kx1, (batch, n_instance, n_dim), dtype=jnp.float32)
    x2 = jax.random.normal(kx2, (batch, n_instance, n_dim), dtype=jnp.float32)
    params = init_params(kp, dims, embed_dim)

    ref = jax.block_until_ready(siamese_forward_ref(x1, x2, params))

    # f32 path: same semantics as the PyTorch module.
    out = jax.block_until_ready(siamese_forward(x1, x2, params))
    assert out.shape == (batch,), out.shape
    assert jnp.allclose(out, ref, atol=2e-3, rtol=2e-3), (out, ref)

    # bf16 matmul-operand path (v6e/v7x MXU rate, half the input HBM traffic);
    # accumulation stays f32, so only a small numerical drift is expected.
    out_bf16 = jax.block_until_ready(
        siamese_forward(x1, x2, params, compute_dtype=jnp.bfloat16))
    assert out_bf16.shape == (batch,)
    assert jnp.allclose(out_bf16, ref, atol=5e-2, rtol=5e-2), (out_bf16, ref)

    # Multi-tile batch grid (G > 1, non-multiple batch exercises padding path).
    big_b = 300
    kb1, kb2 = jax.random.split(kb)
    bx1 = jax.random.normal(kb1, (big_b, n_instance, n_dim), dtype=jnp.float32)
    bx2 = jax.random.normal(kb2, (big_b, n_instance, n_dim), dtype=jnp.float32)
    big_out = jax.block_until_ready(siamese_forward(bx1, bx2, params))
    big_ref = jax.block_until_ready(siamese_forward_ref(bx1, bx2, params))
    assert big_out.shape == (big_b,)
    assert jnp.allclose(big_out, big_ref, atol=2e-3, rtol=2e-3)

    print("KERNEL_OK")
</pallas_src>

<mosaic_0001>
module attributes {stable_mosaic.version = 11 : i64} {
  func.func @siamese_kernel(%arg0: i32, %arg1: memref<8x8x32xf32, #tpu.memory_space<vmem>>, %arg2: memref<8x8x32xf32, #tpu.memory_space<vmem>>, %arg3: memref<32x32xf32, #tpu.memory_space<vmem>>, %arg4: memref<1x32xf32, #tpu.memory_space<vmem>>, %arg5: memref<8x32x64xf32, #tpu.memory_space<vmem>>, %arg6: memref<1x64xf32, #tpu.memory_space<vmem>>, %arg7: memref<64x128xf32, #tpu.memory_space<vmem>>, %arg8: memref<1x128xf32, #tpu.memory_space<vmem>>, %arg9: memref<1x128xf32, #tpu.memory_space<vmem>>, %arg10: memref<1x1xf32, #tpu.memory_space<vmem>>, %arg11: memref<1x8xf32, #tpu.memory_space<vmem>>) attributes {dimension_semantics = [#tpu.dimension_semantics<parallel>], iteration_bounds = array<i64: 1>, scalar_prefetch = 0 : i64, scratch_operands = 0 : i64, tpu.core_type = #tpu.core_type<tc>, window_params = [{transform_indices = @transform_0, window_bounds = array<i64: 8, 8, 32>}, {transform_indices = @transform_1, window_bounds = array<i64: 8, 8, 32>}, {pipeline_mode = #tpu.pipeline_mode<synchronous>, transform_indices = @transform_2, window_bounds = array<i64: 32, 32>}, {pipeline_mode = #tpu.pipeline_mode<synchronous>, transform_indices = @transform_3, window_bounds = array<i64: 1, 32>}, {pipeline_mode = #tpu.pipeline_mode<synchronous>, transform_indices = @transform_4, window_bounds = array<i64: 8, 32, 64>}, {pipeline_mode = #tpu.pipeline_mode<synchronous>, transform_indices = @transform_5, window_bounds = array<i64: 1, 64>}, {pipeline_mode = #tpu.pipeline_mode<synchronous>, transform_indices = @transform_6, window_bounds = array<i64: 64, 128>}, {pipeline_mode = #tpu.pipeline_mode<synchronous>, transform_indices = @transform_7, window_bounds = array<i64: 1, 128>}, {pipeline_mode = #tpu.pipeline_mode<synchronous>, transform_indices = @transform_8, window_bounds = array<i64: 1, 128>}, {pipeline_mode = #tpu.pipeline_mode<synchronous>, transform_indices = @transform_9, window_bounds = array<i64: 1, 1>}, {transform_indices = @transform_10, window_bounds = array<i64: 1, 8>}]} {
    %cst = arith.constant 0.000000e+00 : f32
    %0 = vector.broadcast %cst : f32 to vector<16x64xf32>
    %c0 = arith.constant 0 : index
    %c0_0 = arith.constant 0 : index
    %c0_1 = arith.constant 0 : index
    %1 = vector.load %arg1[%c0, %c0_0, %c0_1] : memref<8x8x32xf32, #tpu.memory_space<vmem>>, vector<8x1x32xf32>
    %2 = vector.shape_cast %1 : vector<8x1x32xf32> to vector<8x32xf32>
    %c0_2 = arith.constant 0 : index
    %c0_3 = arith.constant 0 : index
    %c0_4 = arith.constant 0 : index
    %3 = vector.load %arg2[%c0_2, %c0_3, %c0_4] : memref<8x8x32xf32, #tpu.memory_space<vmem>>, vector<8x1x32xf32>
    %4 = vector.shape_cast %3 : vector<8x1x32xf32> to vector<8x32xf32>
    %5 = tpu.concatenate %2, %4 in 0 : vector<8x32xf32>, vector<8x32xf32> -> vector<16x32xf32>
    %c0_5 = arith.constant 0 : index
    %c0_6 = arith.constant 0 : index
    %6 = vector.load %arg3[%c0_5, %c0_6] : memref<32x32xf32, #tpu.memory_space<vmem>>, vector<32x32xf32>
    %cst_7 = arith.constant dense<0.000000e+00> : vector<16x32xf32>
    %7 = tpu.matmul %5, %6, %cst_7 {dimension_numbers = #tpu.dot_dimension_numbers<[1], [0], [0], [1], [0, 0, 1, 1], [], []>} : vector<16x32xf32>, vector<32x32xf32>, vector<16x32xf32> -> vector<16x32xf32>
    %c0_8 = arith.constant 0 : index
    %c0_9 = arith.constant 0 : index
    %8 = vector.load %arg4[%c0_8, %c0_9] : memref<1x32xf32, #tpu.memory_space<vmem>>, vector<1x32xf32>
    %9 = vector.broadcast %8 : vector<1x32xf32> to vector<16x32xf32>
    %10 = arith.addf %7, %9 : vector<16x32xf32>
    %cst_10 = arith.constant 0.000000e+00 : f32
    %11 = vector.broadcast %cst_10 : f32 to vector<16x32xf32>
    %12 = arith.maximumf %10, %11 : vector<16x32xf32>
    %c0_11 = arith.constant 0 : index
    %c0_12 = arith.constant 0 : index
    %c0_13 = arith.constant 0 : index
    %13 = vector.load %arg5[%c0_11, %c0_12, %c0_13] : memref<8x32x64xf32, #tpu.memory_space<vmem>>, vector<1x32x64xf32>
    %14 = vector.shape_cast %13 : vector<1x32x64xf32> to vector<32x64xf32>
    %cst_14 = arith.constant dense<0.000000e+00> : vector<16x64xf32>
    %15 = tpu.matmul %12, %14, %cst_14 {dimension_numbers = #tpu.dot_dimension_numbers<[1], [0], [0], [1], [0, 0, 1, 1], [], []>} : vector<16x32xf32>, vector<32x64xf32>, vector<16x64xf32> -> vector<16x64xf32>
    %16 = arith.addf %0, %15 : vector<16x64xf32>
    %c0_15 = arith.constant 0 : index
    %c1 = arith.constant 1 : index
    %c0_16 = arith.constant 0 : index
    %17 = vector.load %arg1[%c0_15, %c1, %c0_16] : memref<8x8x32xf32, #tpu.memory_space<vmem>>, vector<8x1x32xf32>
    %18 = vector.shape_cast %17 : vector<8x1x32xf32> to vector<8x32xf32>
    %c0_17 = arith.constant 0 : index
    %c1_18 = arith.constant 1 : index
    %c0_19 = arith.constant 0 : index
    %19 = vector.load %arg2[%c0_17, %c1_18, %c0_19] : memref<8x8x32xf32, #tpu.memory_space<vmem>>, vector<8x1x32xf32>
    %20 = vector.shape_cast %19 : vector<8x1x32xf32> to vector<8x32xf32>
    %21 = tpu.concatenate %18, %20 in 0 : vector<8x32xf32>, vector<8x32xf32> -> vector<16x32xf32>
    %c0_20 = arith.constant 0 : index
    %c0_21 = arith.constant 0 : index
    %22 = vector.load %arg3[%c0_20, %c0_21] : memref<32x32xf32, #tpu.memory_space<vmem>>, vector<32x32xf32>
    %cst_22 = arith.constant dense<0.000000e+00> : vector<16x32xf32>
    %23 = tpu.matmul %21, %22, %cst_22 {dimension_numbers = #tpu.dot_dimension_numbers<[1], [0], [0], [1], [0, 0, 1, 1], [], []>} : vector<16x32xf32>, vector<32x32xf32>, vector<16x32xf32> -> vector<16x32xf32>
    %c0_23 = arith.constant 0 : index
    %c0_24 = arith.constant 0 : index
    %24 = vector.load %arg4[%c0_23, %c0_24] : memref<1x32xf32, #tpu.memory_space<vmem>>, vector<1x32xf32>
    %25 = vector.broadcast %24 : vector<1x32xf32> to vector<16x32xf32>
    %26 = arith.addf %23, %25 : vector<16x32xf32>
    %cst_25 = arith.constant 0.000000e+00 : f32
    %27 = vector.broadcast %cst_25 : f32 to vector<16x32xf32>
    %28 = arith.maximumf %26, %27 : vector<16x32xf32>
    %c1_26 = arith.constant 1 : index
    %c0_27 = arith.constant 0 : index
    %c0_28 = arith.constant 0 : index
    %29 = vector.load %arg5[%c1_26, %c0_27, %c0_28] : memref<8x32x64xf32, #tpu.memory_space<vmem>>, vector<1x32x64xf32>
    %30 = vector.shape_cast %29 : vector<1x32x64xf32> to vector<32x64xf32>
    %cst_29 = arith.constant dense<0.000000e+00> : vector<16x64xf32>
    %31 = tpu.matmul %28, %30, %cst_29 {dimension_numbers = #tpu.dot_dimension_numbers<[1], [0], [0], [1], [0, 0, 1, 1], [], []>} : vector<16x32xf32>, vector<32x64xf32>, vector<16x64xf32> -> vector<16x64xf32>
    %32 = arith.addf %16, %31 : vector<16x64xf32>
    %c0_30 = arith.constant 0 : index
    %c2 = arith.constant 2 : index
    %c0_31 = arith.constant 0 : index
    %33 = vector.load %arg1[%c0_30, %c2, %c0_31] : memref<8x8x32xf32, #tpu.memory_space<vmem>>, vector<8x1x32xf32>
    %34 = vector.shape_cast %33 : vector<8x1x32xf32> to vector<8x32xf32>
    %c0_32 = arith.constant 0 : index
    %c2_33 = arith.constant 2 : index
    %c0_34 = arith.constant 0 : index
    %35 = vector.load %arg2[%c0_32, %c2_33, %c0_34] : memref<8x8x32xf32, #tpu.memory_space<vmem>>, vector<8x1x32xf32>
    %36 = vector.shape_cast %35 : vector<8x1x32xf32> to vector<8x32xf32>
    %37 = tpu.concatenate %34, %36 in 0 : vector<8x32xf32>, vector<8x32xf32> -> vector<16x32xf32>
    %c0_35 = arith.constant 0 : index
    %c0_36 = arith.constant 0 : index
    %38 = vector.load %arg3[%c0_35, %c0_36] : memref<32x32xf32, #tpu.memory_space<vmem>>, vector<32x32xf32>
    %cst_37 = arith.constant dense<0.000000e+00> : vector<16x32xf32>
    %39 = tpu.matmul %37, %38, %cst_37 {dimension_numbers = #tpu.dot_dimension_numbers<[1], [0], [0], [1], [0, 0, 1, 1], [], []>} : vector<16x32xf32>, vector<32x32xf32>, vector<16x32xf32> -> vector<16x32xf32>
    %c0_38 = arith.constant 0 : index
    %c0_39 = arith.constant 0 : index
    %40 = vector.load %arg4[%c0_38, %c0_39] : memref<1x32xf32, #tpu.memory_space<vmem>>, vector<1x32xf32>
    %41 = vector.broadcast %40 : vector<1x32xf32> to vector<16x32xf32>
    %42 = arith.addf %39, %41 : vector<16x32xf32>
    %cst_40 = arith.constant 0.000000e+00 : f32
    %43 = vector.broadcast %cst_40 : f32 to vector<16x32xf32>
    %44 = arith.maximumf %42, %43 : vector<16x32xf32>
    %c2_41 = arith.constant 2 : index
    %c0_42 = arith.constant 0 : index
    %c0_43 = arith.constant 0 : index
    %45 = vector.load %arg5[%c2_41, %c0_42, %c0_43] : memref<8x32x64xf32, #tpu.memory_space<vmem>>, vector<1x32x64xf32>
    %46 = vector.shape_cast %45 : vector<1x32x64xf32> to vector<32x64xf32>
    %cst_44 = arith.constant dense<0.000000e+00> : vector<16x64xf32>
    %47 = tpu.matmul %44, %46, %cst_44 {dimension_numbers = #tpu.dot_dimension_numbers<[1], [0], [0], [1], [0, 0, 1, 1], [], []>} : vector<16x32xf32>, vector<32x64xf32>, vector<16x64xf32> -> vector<16x64xf32>
    %48 = arith.addf %32, %47 : vector<16x64xf32>
    %c0_45 = arith.constant 0 : index
    %c3 = arith.constant 3 : index
    %c0_46 = arith.constant 0 : index
    %49 = vector.load %arg1[%c0_45, %c3, %c0_46] : memref<8x8x32xf32, #tpu.memory_space<vmem>>, vector<8x1x32xf32>
    %50 = vector.shape_cast %49 : vector<8x1x32xf32> to vector<8x32xf32>
    %c0_47 = arith.constant 0 : index
    %c3_48 = arith.constant 3 : index
    %c0_49 = arith.constant 0 : index
    %51 = vector.load %arg2[%c0_47, %c3_48, %c0_49] : memref<8x8x32xf32, #tpu.memory_space<vmem>>, vector<8x1x32xf32>
    %52 = vector.shape_cast %51 : vector<8x1x32xf32> to vector<8x32xf32>
    %53 = tpu.concatenate %50, %52 in 0 : vector<8x32xf32>, vector<8x32xf32> -> vector<16x32xf32>
    %c0_50 = arith.constant 0 : index
    %c0_51 = arith.constant 0 : index
    %54 = vector.load %arg3[%c0_50, %c0_51] : memref<32x32xf32, #tpu.memory_space<vmem>>, vector<32x32xf32>
    %cst_52 = arith.constant dense<0.000000e+00> : vector<16x32xf32>
    %55 = tpu.matmul %53, %54, %cst_52 {dimension_numbers = #tpu.dot_dimension_numbers<[1], [0], [0], [1], [0, 0, 1, 1], [], []>} : vector<16x32xf32>, vector<32x32xf32>, vector<16x32xf32> -> vector<16x32xf32>
    %c0_53 = arith.constant 0 : index
    %c0_54 = arith.constant 0 : index
    %56 = vector.load %arg4[%c0_53, %c0_54] : memref<1x32xf32, #tpu.memory_space<vmem>>, vector<1x32xf32>
    %57 = vector.broadcast %56 : vector<1x32xf32> to vector<16x32xf32>
    %58 = arith.addf %55, %57 : vector<16x32xf32>
    %cst_55 = arith.constant 0.000000e+00 : f32
    %59 = vector.broadcast %cst_55 : f32 to vector<16x32xf32>
    %60 = arith.maximumf %58, %59 : vector<16x32xf32>
    %c3_56 = arith.constant 3 : index
    %c0_57 = arith.constant 0 : index
    %c0_58 = arith.constant 0 : index
    %61 = vector.load %arg5[%c3_56, %c0_57, %c0_58] : memref<8x32x64xf32, #tpu.memory_space<vmem>>, vector<1x32x64xf32>
    %62 = vector.shape_cast %61 : vector<1x32x64xf32> to vector<32x64xf32>
    %cst_59 = arith.constant dense<0.000000e+00> : vector<16x64xf32>
    %63 = tpu.matmul %60, %62, %cst_59 {dimension_numbers = #tpu.dot_dimension_numbers<[1], [0], [0], [1], [0, 0, 1, 1], [], []>} : vector<16x32xf32>, vector<32x64xf32>, vector<16x64xf32> -> vector<16x64xf32>
    %64 = arith.addf %48, %63 : vector<16x64xf32>
    %c0_60 = arith.constant 0 : index
    %c4 = arith.constant 4 : index
    %c0_61 = arith.constant 0 : index
    %65 = vector.load %arg1[%c0_60, %c4, %c0_61] : memref<8x8x32xf32, #tpu.memory_space<vmem>>, vector<8x1x32xf32>
    %66 = vector.shape_cast %65 : vector<8x1x32xf32> to vector<8x32xf32>
    %c0_62 = arith.constant 0 : index
    %c4_63 = arith.constant 4 : index
    %c0_64 = arith.constant 0 : index
    %67 = vector.load %arg2[%c0_62, %c4_63, %c0_64] : memref<8x8x32xf32, #tpu.memory_space<vmem>>, vector<8x1x32xf32>
    %68 = vector.shape_cast %67 : vector<8x1x32xf32> to vector<8x32xf32>
    %69 = tpu.concatenate %66, %68 in 0 : vector<8x32xf32>, vector<8x32xf32> -> vector<16x32xf32>
    %c0_65 = arith.constant 0 : index
    %c0_66 = arith.constant 0 : index
    %70 = vector.load %arg3[%c0_65, %c0_66] : memref<32x32xf32, #tpu.memory_space<vmem>>, vector<32x32xf32>
    %cst_67 = arith.constant dense<0.000000e+00> : vector<16x32xf32>
    %71 = tpu.matmul %69, %70, %cst_67 {dimension_numbers = #tpu.dot_dimension_numbers<[1], [0], [0], [1], [0, 0, 1, 1], [], []>} : vector<16x32xf32>, vector<32x32xf32>, vector<16x32xf32> -> vector<16x32xf32>
    %c0_68 = arith.constant 0 : index
    %c0_69 = arith.constant 0 : index
    %72 = vector.load %arg4[%c0_68, %c0_69] : memref<1x32xf32, #tpu.memory_space<vmem>>, vector<1x32xf32>
    %73 = vector.broadcast %72 : vector<1x32xf32> to vector<16x32xf32>
    %74 = arith.addf %71, %73 : vector<16x32xf32>
    %cst_70 = arith.constant 0.000000e+00 : f32
    %75 = vector.broadcast %cst_70 : f32 to vector<16x32xf32>
    %76 = arith.maximumf %74, %75 : vector<16x32xf32>
    %c4_71 = arith.constant 4 : index
    %c0_72 = arith.constant 0 : index
    %c0_73 = arith.constant 0 : index
    %77 = vector.load %arg5[%c4_71, %c0_72, %c0_73] : memref<8x32x64xf32, #tpu.memory_space<vmem>>, vector<1x32x64xf32>
    %78 = vector.shape_cast %77 : vector<1x32x64xf32> to vector<32x64xf32>
    %cst_74 = arith.constant dense<0.000000e+00> : vector<16x64xf32>
    %79 = tpu.matmul %76, %78, %cst_74 {dimension_numbers = #tpu.dot_dimension_numbers<[1], [0], [0], [1], [0, 0, 1, 1], [], []>} : vector<16x32xf32>, vector<32x64xf32>, vector<16x64xf32> -> vector<16x64xf32>
    %80 = arith.addf %64, %79 : vector<16x64xf32>
    %c0_75 = arith.constant 0 : index
    %c5 = arith.constant 5 : index
    %c0_76 = arith.constant 0 : index
    %81 = vector.load %arg1[%c0_75, %c5, %c0_76] : memref<8x8x32xf32, #tpu.memory_space<vmem>>, vector<8x1x32xf32>
    %82 = vector.shape_cast %81 : vector<8x1x32xf32> to vector<8x32xf32>
    %c0_77 = arith.constant 0 : index
    %c5_78 = arith.constant 5 : index
    %c0_79 = arith.constant 0 : index
    %83 = vector.load %arg2[%c0_77, %c5_78, %c0_79] : memref<8x8x32xf32, #tpu.memory_space<vmem>>, vector<8x1x32xf32>
    %84 = vector.shape_cast %83 : vector<8x1x32xf32> to vector<8x32xf32>
    %85 = tpu.concatenate %82, %84 in 0 : vector<8x32xf32>, vector<8x32xf32> -> vector<16x32xf32>
    %c0_80 = arith.constant 0 : index
    %c0_81 = arith.constant 0 : index
    %86 = vector.load %arg3[%c0_80, %c0_81] : memref<32x32xf32, #tpu.memory_space<vmem>>, vector<32x32xf32>
    %cst_82 = arith.constant dense<0.000000e+00> : vector<16x32xf32>
    %87 = tpu.matmul %85, %86, %cst_82 {dimension_numbers = #tpu.dot_dimension_numbers<[1], [0], [0], [1], [0, 0, 1, 1], [], []>} : vector<16x32xf32>, vector<32x32xf32>, vector<16x32xf32> -> vector<16x32xf32>
    %c0_83 = arith.constant 0 : index
    %c0_84 = arith.constant 0 : index
    %88 = vector.load %arg4[%c0_83, %c0_84] : memref<1x32xf32, #tpu.memory_space<vmem>>, vector<1x32xf32>
    %89 = vector.broadcast %88 : vector<1x32xf32> to vector<16x32xf32>
    %90 = arith.addf %87, %89 : vector<16x32xf32>
    %cst_85 = arith.constant 0.000000e+00 : f32
    %91 = vector.broadcast %cst_85 : f32 to vector<16x32xf32>
    %92 = arith.maximumf %90, %91 : vector<16x32xf32>
    %c5_86 = arith.constant 5 : index
    %c0_87 = arith.constant 0 : index
    %c0_88 = arith.constant 0 : index
    %93 = vector.load %arg5[%c5_86, %c0_87, %c0_88] : memref<8x32x64xf32, #tpu.memory_space<vmem>>, vector<1x32x64xf32>
    %94 = vector.shape_cast %93 : vector<1x32x64xf32> to vector<32x64xf32>
    %cst_89 = arith.constant dense<0.000000e+00> : vector<16x64xf32>
    %95 = tpu.matmul %92, %94, %cst_89 {dimension_numbers = #tpu.dot_dimension_numbers<[1], [0], [0], [1], [0, 0, 1, 1], [], []>} : vector<16x32xf32>, vector<32x64xf32>, vector<16x64xf32> -> vector<16x64xf32>
    %96 = arith.addf %80, %95 : vector<16x64xf32>
    %c0_90 = arith.constant 0 : index
    %c6 = arith.constant 6 : index
    %c0_91 = arith.constant 0 : index
    %97 = vector.load %arg1[%c0_90, %c6, %c0_91] : memref<8x8x32xf32, #tpu.memory_space<vmem>>, vector<8x1x32xf32>
    %98 = vector.shape_cast %97 : vector<8x1x32xf32> to vector<8x32xf32>
    %c0_92 = arith.constant 0 : index
    %c6_93 = arith.constant 6 : index
    %c0_94 = arith.constant 0 : index
    %99 = vector.load %arg2[%c0_92, %c6_93, %c0_94] : memref<8x8x32xf32, #tpu.memory_space<vmem>>, vector<8x1x32xf32>
    %100 = vector.shape_cast %99 : vector<8x1x32xf32> to vector<8x32xf32>
    %101 = tpu.concatenate %98, %100 in 0 : vector<8x32xf32>, vector<8x32xf32> -> vector<16x32xf32>
    %c0_95 = arith.constant 0 : index
    %c0_96 = arith.constant 0 : index
    %102 = vector.load %arg3[%c0_95, %c0_96] : memref<32x32xf32, #tpu.memory_space<vmem>>, vector<32x32xf32>
    %cst_97 = arith.constant dense<0.000000e+00> : vector<16x32xf32>
    %103 = tpu.matmul %101, %102, %cst_97 {dimension_numbers = #tpu.dot_dimension_numbers<[1], [0], [0], [1], [0, 0, 1, 1], [], []>} : vector<16x32xf32>, vector<32x32xf32>, vector<16x32xf32> -> vector<16x32xf32>
    %c0_98 = arith.constant 0 : index
    %c0_99 = arith.constant 0 : index
    %104 = vector.load %arg4[%c0_98, %c0_99] : memref<1x32xf32, #tpu.memory_space<vmem>>, vector<1x32xf32>
    %105 = vector.broadcast %104 : vector<1x32xf32> to vector<16x32xf32>
    %106 = arith.addf %103, %105 : vector<16x32xf32>
    %cst_100 = arith.constant 0.000000e+00 : f32
    %107 = vector.broadcast %cst_100 : f32 to vector<16x32xf32>
    %108 = arith.maximumf %106, %107 : vector<16x32xf32>
    %c6_101 = arith.constant 6 : index
    %c0_102 = arith.constant 0 : index
    %c0_103 = arith.constant 0 : index
    %109 = vector.load %arg5[%c6_101, %c0_102, %c0_103] : memref<8x32x64xf32, #tpu.memory_space<vmem>>, vector<1x32x64xf32>
    %110 = vector.shape_cast %109 : vector<1x32x64xf32> to vector<32x64xf32>
    %cst_104 = arith.constant dense<0.000000e+00> : vector<16x64xf32>
    %111 = tpu.matmul %108, %110, %cst_104 {dimension_numbers = #tpu.dot_dimension_numbers<[1], [0], [0], [1], [0, 0, 1, 1], [], []>} : vector<16x32xf32>, vector<32x64xf32>, vector<16x64xf32> -> vector<16x64xf32>
    %112 = arith.addf %96, %111 : vector<16x64xf32>
    %c0_105 = arith.constant 0 : index
    %c7 = arith.constant 7 : index
    %c0_106 = arith.constant 0 : index
    %113 = vector.load %arg1[%c0_105, %c7, %c0_106] : memref<8x8x32xf32, #tpu.memory_space<vmem>>, vector<8x1x32xf32>
    %114 = vector.shape_cast %113 : vector<8x1x32xf32> to vector<8x32xf32>
    %c0_107 = arith.constant 0 : index
    %c7_108 = arith.constant 7 : index
    %c0_109 = arith.constant 0 : index
    %115 = vector.load %arg2[%c0_107, %c7_108, %c0_109] : memref<8x8x32xf32, #tpu.memory_space<vmem>>, vector<8x1x32xf32>
    %116 = vector.shape_cast %115 : vector<8x1x32xf32> to vector<8x32xf32>
    %117 = tpu.concatenate %114, %116 in 0 : vector<8x32xf32>, vector<8x32xf32> -> vector<16x32xf32>
    %c0_110 = arith.constant 0 : index
    %c0_111 = arith.constant 0 : index
    %118 = vector.load %arg3[%c0_110, %c0_111] : memref<32x32xf32, #tpu.memory_space<vmem>>, vector<32x32xf32>
    %cst_112 = arith.constant dense<0.000000e+00> : vector<16x32xf32>
    %119 = tpu.matmul %117, %118, %cst_112 {dimension_numbers = #tpu.dot_dimension_numbers<[1], [0], [0], [1], [0, 0, 1, 1], [], []>} : vector<16x32xf32>, vector<32x32xf32>, vector<16x32xf32> -> vector<16x32xf32>
    %c0_113 = arith.constant 0 : index
    %c0_114 = arith.constant 0 : index
    %120 = vector.load %arg4[%c0_113, %c0_114] : memref<1x32xf32, #tpu.memory_space<vmem>>, vector<1x32xf32>
    %121 = vector.broadcast %120 : vector<1x32xf32> to vector<16x32xf32>
    %122 = arith.addf %119, %121 : vector<16x32xf32>
    %cst_115 = arith.constant 0.000000e+00 : f32
    %123 = vector.broadcast %cst_115 : f32 to vector<16x32xf32>
    %124 = arith.maximumf %122, %123 : vector<16x32xf32>
    %c7_116 = arith.constant 7 : index
    %c0_117 = arith.constant 0 : index
    %c0_118 = arith.constant 0 : index
    %125 = vector.load %arg5[%c7_116, %c0_117, %c0_118] : memref<8x32x64xf32, #tpu.memory_space<vmem>>, vector<1x32x64xf32>
    %126 = vector.shape_cast %125 : vector<1x32x64xf32> to vector<32x64xf32>
    %cst_119 = arith.constant dense<0.000000e+00> : vector<16x64xf32>
    %127 = tpu.matmul %124, %126, %cst_119 {dimension_numbers = #tpu.dot_dimension_numbers<[1], [0], [0], [1], [0, 0, 1, 1], [], []>} : vector<16x32xf32>, vector<32x64xf32>, vector<16x64xf32> -> vector<16x64xf32>
    %128 = arith.addf %112, %127 : vector<16x64xf32>
    %c0_120 = arith.constant 0 : index
    %c0_121 = arith.constant 0 : index
    %129 = vector.load %arg6[%c0_120, %c0_121] : memref<1x64xf32, #tpu.memory_space<vmem>>, vector<1x64xf32>
    %130 = vector.broadcast %129 : vector<1x64xf32> to vector<16x64xf32>
    %131 = arith.addf %128, %130 : vector<16x64xf32>
    %cst_122 = arith.constant 0.000000e+00 : f32
    %132 = vector.broadcast %cst_122 : f32 to vector<16x64xf32>
    %133 = arith.maximumf %131, %132 : vector<16x64xf32>
    %c0_123 = arith.constant 0 : index
    %c0_124 = arith.constant 0 : index
    %134 = vector.load %arg7[%c0_123, %c0_124] : memref<64x128xf32, #tpu.memory_space<vmem>>, vector<64x128xf32>
    %cst_125 = arith.constant dense<0.000000e+00> : vector<16x128xf32>
    %135 = tpu.matmul %133, %134, %cst_125 {dimension_numbers = #tpu.dot_dimension_numbers<[1], [0], [0], [1], [0, 0, 1, 1], [], []>} : vector<16x64xf32>, vector<64x128xf32>, vector<16x128xf32> -> vector<16x128xf32>
    %c0_126 = arith.constant 0 : index
    %c0_127 = arith.constant 0 : index
    %136 = vector.load %arg8[%c0_126, %c0_127] : memref<1x128xf32, #tpu.memory_space<vmem>>, vector<1x128xf32>
    %137 = vector.broadcast %136 : vector<1x128xf32> to vector<16x128xf32>
    %138 = arith.addf %135, %137 : vector<16x128xf32>
    %139 = vector.extract_strided_slice %138 {offsets = [0, 0], sizes = [8, 128], strides = [1, 1]} : vector<16x128xf32> to vector<8x128xf32>
    %140 = vector.extract_strided_slice %138 {offsets = [8, 0], sizes = [8, 128], strides = [1, 1]} : vector<16x128xf32> to vector<8x128xf32>
    %141 = arith.subf %139, %140 : vector<8x128xf32>
    %142 = math.absf %141 : vector<8x128xf32>
    %c0_128 = arith.constant 0 : index
    %c0_129 = arith.constant 0 : index
    %143 = vector.load %arg9[%c0_128, %c0_129] : memref<1x128xf32, #tpu.memory_space<vmem>>, vector<1x128xf32>
    %cst_130 = arith.constant dense<0.000000e+00> : vector<1x8xf32>
    %144 = tpu.matmul %143, %142, %cst_130 {dimension_numbers = #tpu.dot_dimension_numbers<[1], [1], [0], [0], [0, 0, 1, 0], [], []>} : vector<1x128xf32>, vector<8x128xf32>, vector<1x8xf32> -> vector<1x8xf32>
    %c0_131 = arith.constant 0 : index
    %c0_132 = arith.constant 0 : index
    %145 = vector.load %arg10[%c0_131, %c0_132] : memref<1x1xf32, #tpu.memory_space<vmem>>, vector<1x1xf32>
    %146 = vector.broadcast %145 : vector<1x1xf32> to vector<1x8xf32>
    %147 = arith.addf %144, %146 : vector<1x8xf32>
    %c0_133 = arith.constant 0 : index
    %c0_134 = arith.constant 0 : index
    %148 = vector.load %arg11[%c0_133, %c0_134] : memref<1x8xf32, #tpu.memory_space<vmem>>, vector<1x8xf32>
    tpu.vector_store %arg11[%c0_133, %c0_134], %147 {strides = array<i32>} : memref<1x8xf32, #tpu.memory_space<vmem>>, vector<1x8xf32>,
    return
  }
  func.func @transform_0(%arg0: i32) -> (i32, i32, i32) {
    %c0_i32 = arith.constant 0 : i32
    %c0_i32_0 = arith.constant 0 : i32
    %c0_i32_1 = arith.constant 0 : i32
    return %arg0, %c0_i32, %c0_i32_0 : i32, i32, i32
  }
  func.func @transform_1(%arg0: i32) -> (i32, i32, i32) {
    %c0_i32 = arith.constant 0 : i32
    %c0_i32_0 = arith.constant 0 : i32
    %c0_i32_1 = arith.constant 0 : i32
    return %arg0, %c0_i32, %c0_i32_0 : i32, i32, i32
  }
  func.func @transform_2(%arg0: i32) -> (i32, i32) {
    %c0_i32 = arith.constant 0 : i32
    %c0_i32_0 = arith.constant 0 : i32
    %c0_i32_1 = arith.constant 0 : i32
    return %c0_i32, %c0_i32_0 : i32, i32
  }
  func.func @transform_3(%arg0: i32) -> (i32, i32) {
    %c0_i32 = arith.constant 0 : i32
    %c0_i32_0 = arith.constant 0 : i32
    %c0_i32_1 = arith.constant 0 : i32
    return %c0_i32, %c0_i32_0 : i32, i32
  }
  func.func @transform_4(%arg0: i32) -> (i32, i32, i32) {
    %c0_i32 = arith.constant 0 : i32
    %c0_i32_0 = arith.constant 0 : i32
    %c0_i32_1 = arith.constant 0 : i32
    %c0_i32_2 = arith.constant 0 : i32
    return %c0_i32, %c0_i32_0, %c0_i32_1 : i32, i32, i32
  }
  func.func @transform_5(%arg0: i32) -> (i32, i32) {
    %c0_i32 = arith.constant 0 : i32
    %c0_i32_0 = arith.constant 0 : i32
    %c0_i32_1 = arith.constant 0 : i32
    return %c0_i32, %c0_i32_0 : i32, i32
  }
  func.func @transform_6(%arg0: i32) -> (i32, i32) {
    %c0_i32 = arith.constant 0 : i32
    %c0_i32_0 = arith.constant 0 : i32
    %c0_i32_1 = arith.constant 0 : i32
    return %c0_i32, %c0_i32_0 : i32, i32
  }
  func.func @transform_7(%arg0: i32) -> (i32, i32) {
    %c0_i32 = arith.constant 0 : i32
    %c0_i32_0 = arith.constant 0 : i32
    %c0_i32_1 = arith.constant 0 : i32
    return %c0_i32, %c0_i32_0 : i32, i32
  }
  func.func @transform_8(%arg0: i32) -> (i32, i32) {
    %c0_i32 = arith.constant 0 : i32
    %c0_i32_0 = arith.constant 0 : i32
    %c0_i32_1 = arith.constant 0 : i32
    return %c0_i32, %c0_i32_0 : i32, i32
  }
  func.func @transform_9(%arg0: i32) -> (i32, i32) {
    %c0_i32 = arith.constant 0 : i32
    %c0_i32_0 = arith.constant 0 : i32
    %c0_i32_1 = arith.constant 0 : i32
    return %c0_i32, %c0_i32_0 : i32, i32
  }
  func.func @transform_10(%arg0: i32) -> (i32, i32) {
    %c0_i32 = arith.constant 0 : i32
    %c0_i32_0 = arith.constant 0 : i32
    return %c0_i32, %arg0 : i32, i32
  }
}

</mosaic_0001>

<bundles_post_ra>
// kernel: tpu_custom_call.1
= control target key start
LH: loop header
LB: loop body
LE: loop exit
PB: predicated region body
PF: predicated region fallthrough
CT: control target
= control target key end

     0   :  { %s3201_s0 = inlined_call_operand.hbm [shape: f32[8,8,32], index: 0, kind: input, shape index: {}]   ;;  %s3202_s1 = inlined_call_operand.hbm [shape: f32[8,8,32], index: 1, kind: input, shape index: {}]   ;;  %s3203_s2 = inlined_call_operand.hbm [shape: f32[32,32], index: 2, kind: input, shape index: {}]   ;;  %s3204_s3 = inlined_call_operand.vmem [shape: f32[1,32], index: 3, kind: input, shape index: {}]   ;;  %s3205_s4 = inlined_call_operand.hbm [shape: f32[8,32,64], index: 4, kind: input, shape index: {}]   ;;  %s3206_s5 = inlined_call_operand.vmem [shape: f32[1,64], index: 5, kind: input, shape index: {}]   ;;  %s3207_s6 = inlined_call_operand.hbm [shape: f32[64,128], index: 6, kind: input, shape index: {}]   ;;  %s3208_s7 = inlined_call_operand.vmem [shape: f32[1,128], index: 7, kind: input, shape index: {}]   ;;  %s3209_s8 = inlined_call_operand.vmem [shape: f32[1,128], index: 8, kind: input, shape index: {}]   ;;  %s3210_s9 = inlined_call_operand.<no memory space> [shape: f32[1,1], index: 9, kind: input, shape index: {}]   ;;  %s3211_s10 = inlined_call_operand.hbm [shape: f32[1,8], index: 10, kind: output, shape index: {}]  }
   0x1   :  { %v15_v0 = vstv %s3210_s9 }
   0x2   :  { %16 = vst [vmem:[#allocation2] sm:$0x1] %v15_v0 }
   0x3   :  { %17 = vsyncpa [#allocation4], 0 }
   0x4   :  { %18 = vsyncpa [#allocation7], 0 }
   0x5   :  { %19 = vsyncpa [#allocation10], 0 }
   0x6   :  { %20 = vsyncpa [#allocation5], 0  ;;  %s2817_s15 = smov [#allocation6]   ;;  %s2818_s17 = smov [#allocation9]  }
   0x7   :  { %s38_s16 = sshll.u32 %s2817_s15, 4  ;;  %s64_s18 = sshll.u32 %s2818_s17, 4  ;;  %s39_s16 = int_to_ptr.vmem [resolvable:$true] %s38_s16  ;;  %s2886_s18 = int_to_ptr.vmem [resolvable:$true] %s64_s18 }
   0x8   :  { %s2677_s21 = scalar_lea.hbm %s3202_s1, 1024 }
   0x9   :  { %p2678_p0 = scmp.ne.s32.totalorder %s3202_s1, %s2677_s21  ;;  %p2681_p1 = scmp.lt.u32.totalorder %s2677_s21, %s3202_s1 }
   0xb   :  { %p2683_p2 = pnand %p2681_p1, %p2678_p0 }
   0xd   :  { %2686 = shalt.err (!%p2683_p2)
}
   0xe   :  { %s2687_s25 = scalar_lea.vmem %s39_s16, 1024  ;;  %p2692_p4 = scmp.lt.s32.totalorder %s39_s16, %s39_s16 }
   0xf   :  { %p2688_p3 = scmp.ne.s32.totalorder %s39_s16, %s2687_s25  ;;  %p2693_p5 = scmp.lt.s32.totalorder %s2687_s25, %s2687_s25 }
  0x11   :  { %p2694_p6 = por %p2693_p5, %p2692_p4 }
  0x13   :  { %p2695_p7 = pnand %p2694_p6, %p2688_p3 }
  0x15   :  { %2698 = shalt.err (!%p2695_p7)
}
  0x16   :  { %s2819_s26 = smov 128   ;;  %s2820_s27 = smov 8  }
  0x17   :  { %44 = dma.hbm_to_vmem [thread:$0]  %s3202_s1, 1024, %s39_s16, [#allocation7], %s2819_s26, %s2819_s26, %s2820_s27  }
  0x18   :  { %s2699_s12 = scalar_lea.hbm %s3205_s4, 4096 }
  0x19   :  { %p2700_p8 = scmp.ne.s32.totalorder %s3205_s4, %s2699_s12  ;;  %p2703_p9 = scmp.lt.u32.totalorder %s2699_s12, %s3205_s4 }
  0x1b   :  { %p2705_p10 = pnand %p2703_p9, %p2700_p8 }
  0x1d   :  { %2708 = shalt.err (!%p2705_p10)
}
  0x1e   :  { %s2709_s19 = scalar_lea.vmem %s2886_s18, 4096  ;;  %p2714_p12 = scmp.lt.s32.totalorder %s2886_s18, %s2886_s18 }
  0x1f   :  { %p2710_p11 = scmp.ne.s32.totalorder %s2886_s18, %s2709_s19  ;;  %p2715_p13 = scmp.lt.s32.totalorder %s2709_s19, %s2709_s19 }
  0x21   :  { %p2716_p0 = por %p2715_p13, %p2714_p12 }
  0x23   :  { %p2717_p1 = pnand %p2716_p0, %p2710_p11 }
  0x25   :  { %2720 = shalt.err (!%p2717_p1)
}
  0x26   :  { %70 = dma.hbm_to_vmem [thread:$0]  %s3205_s4, 4096, %s2886_s18, [#allocation10], %s2819_s26, %s2819_s26, %s2820_s27  }
  0x27   :  { %s2821_s20 = smov [#allocation3]   ;;  %s2822_s22 = smov [#allocation8]  }
  0x28   :  { %s26_s21 = sshll.u32 %s2821_s20, 4  ;;  %s50_s23 = sshll.u32 %s2822_s22, 4  ;;  %s27_s21 = int_to_ptr.vmem [resolvable:$true] %s26_s21  ;;  %s2923_s23 = int_to_ptr.vmem [resolvable:$true] %s50_s23 }
  0x29   :  { %s2721_s25 = scalar_lea.hbm %s3201_s0, 1024 }
  0x2a   :  { %p2722_p2 = scmp.ne.s32.totalorder %s3201_s0, %s2721_s25  ;;  %p2725_p3 = scmp.lt.u32.totalorder %s2721_s25, %s3201_s0 }
  0x2c   :  { %p2727_p4 = pnand %p2725_p3, %p2722_p2 }
  0x2e   :  { %2730 = shalt.err (!%p2727_p4)
}
  0x2f   :  { %s2731_s4 = scalar_lea.vmem %s27_s21, 1024  ;;  %p2736_p6 = scmp.lt.s32.totalorder %s27_s21, %s27_s21 }
  0x30   :  { %p2732_p5 = scmp.ne.s32.totalorder %s27_s21, %s2731_s4  ;;  %p2737_p7 = scmp.lt.s32.totalorder %s2731_s4, %s2731_s4 }
  0x32   :  { %p2738_p8 = por %p2737_p7, %p2736_p6 }
  0x34   :  { %p2739_p9 = pnand %p2738_p8, %p2732_p5 }
  0x36   :  { %2742 = shalt.err (!%p2739_p9)
}
  0x37   :  { %32 = dma.hbm_to_vmem [thread:$0]  %s3201_s0, 1024, %s27_s21, [#allocation4], %s2819_s26, %s2819_s26, %s2820_s27  }
  0x38   :  { %s2743_s15 = scalar_lea.hbm %s3203_s2, 512 }
  0x39   :  { %p2744_p10 = scmp.ne.s32.totalorder %s3203_s2, %s2743_s15  ;;  %p2747_p11 = scmp.lt.u32.totalorder %s2743_s15, %s3203_s2 }
  0x3b   :  { %p2749_p12 = pnand %p2747_p11, %p2744_p10 }
  0x3d   :  { %2752 = shalt.err (!%p2749_p12)
}
  0x3e   :  { %s2753_s20 = scalar_lea.vmem %s2923_s23, 512  ;;  %p2758_p0 = scmp.lt.s32.totalorder %s2923_s23, %s2923_s23 }
  0x3f   :  { %p2754_p13 = scmp.ne.s32.totalorder %s2923_s23, %s2753_s20  ;;  %p2759_p1 = scmp.lt.s32.totalorder %s2753_s20, %s2753_s20 }
  0x41   :  { %p2760_p2 = por %p2759_p1, %p2758_p0 }
  0x43   :  { %p2761_p3 = pnand %p2760_p2, %p2754_p13 }
  0x45   :  { %2764 = shalt.err (!%p2761_p3)
}
  0x46   :  { %56 = dma.hbm_to_vmem [thread:$0]  %s3203_s2, 512, %s2923_s23, [#allocation7], %s2819_s26, %s2819_s26, %s2820_s27  }
  0x47   :  { %s2823_s22 = smov [#allocation11]   ;;  %s2765_s28 = scalar_lea.hbm %s3207_s6, 1024 }
  0x48   :  { %s78_s9 = sshll.u32 %s2823_s22, 4  ;;  %p2766_p4 = scmp.ne.s32.totalorder %s3207_s6, %s2765_s28  ;;  %s79_s9 = int_to_ptr.vmem [resolvable:$true] %s78_s9 }
  0x49   :  { %p2769_p5 = scmp.lt.u32.totalorder %s2765_s28, %s3207_s6 }
  0x4b   :  { %p2771_p6 = pnand %p2769_p5, %p2766_p4 }
  0x4d   :  { %2774 = shalt.err (!%p2771_p6)
}
  0x4e   :  { %s2775_s18 = scalar_lea.vmem %s79_s9, 1024  ;;  %p2780_p8 = scmp.lt.s32.totalorder %s79_s9, %s79_s9 }
  0x4f   :  { %p2776_p7 = scmp.ne.s32.totalorder %s79_s9, %s2775_s18  ;;  %p2781_p9 = scmp.lt.s32.totalorder %s2775_s18, %s2775_s18 }
  0x51   :  { %p2782_p10 = por %p2781_p9, %p2780_p8 }
  0x53   :  { %p2783_p11 = pnand %p2782_p10, %p2776_p7 }
  0x55   :  { %2786 = shalt.err (!%p2783_p11)
}
  0x56   :  { %84 = dma.hbm_to_vmem [thread:$0]  %s3207_s6, 1024, %s79_s9, [#allocation10], %s2819_s26, %s2819_s26, %s2820_s27  }
  0x57   :  { %2809 = dma.done.wait [#allocation4], 1024  }
  0x58   :  { %2810 = vsyncadd [#allocation4], 4294966272 }
  0x59   :  { %2811 = dma.done.wait [#allocation7], 1536  }
  0x5a   :  { %2812 = vsyncadd [#allocation7], 4294965760 }
  0x5b   :  { %2813 = dma.done.wait [#allocation10], 5120  }
  0x5c   :  { %2814 = vsyncadd [#allocation10], 4294962176  ;;  %vm131_vm0 = vcmask 1041409   ;;  %vm134_vm1 = vcmask 1042434   ;;  %vm137_vm2 = vcmask 1043459   ;;  %v173_v1 = vld [vmem:[#allocation8] sm:$0xff] }
  0x5d   :  { %v174_v2 = vld [vmem:[#allocation8 + $0x8] sm:$0xff]  ;;  %v175_v3 = vld [vmem:[#allocation8 + $0x10] sm:$0xff]  ;;  %vm140_vm3 = vcmask 1044484   ;;  %vm143_vm4 = vcmask 1045509   ;;  %vm146_vm5 = vcmask 1046534   ;;  %v176_v5 = vld [vmem:[#allocation8 + $0x18] sm:$0xff] }
  0x5e   :  { %v2975_v4 = vpack.c.bf16 %v174_v2, %v173_v1  ;;  %vm149_vm6 = vcmask 1047559   ;;  %v270_v6 = vld [vmem:[#allocation3 + $0x1] sm:$0x1]  ;;  %v271_v7 = vld [vmem:[#allocation3 + $0x9] sm:$0x1]  ;;  %v2977_v8 = vpack.c.bf16 %v176_v5, %v175_v3  ;;  %vm184_vm7 = vcmask 261120  }
  0x5f   :  { %v272_v9 = vld [vmem:[#allocation3 + $0x11] sm:$0x1]  ;;  %v273_v10 = vld [vmem:[#allocation3 + $0x19] sm:$0x1]  ;;  %v274_v11 = vld [vmem:[#allocation3 + $0x21] sm:$0x1] }
  0x60   :  { %2516 = vmatprep.subr.bf16.mxu1 %v2975_v4  ;;  %2508 = vmatprep.subr.bf16.mxu0 %v2975_v4  ;;  %v275_v12 = vld [vmem:[#allocation3 + $0x29] sm:$0x1]  ;;  %v276_v13 = vld [vmem:[#allocation3 + $0x31] sm:$0x1]  ;;  %v277_v14 = vld [vmem:[#allocation3 + $0x39] sm:$0x1] }
  0x61   :  { %2518 = vmatpush3.bf16.msra.mxu1 %v2975_v4  ;;  %v294_v15 = vrot.slane %v271_v7, 7  ;;  %v296_v16 = vrot.slane %v272_v9, 6  ;;  %v298_v17 = vrot.slane %v273_v10, 5  ;;  %2510 = vmatpush3.bf16.msra.mxu0 %v2975_v4  ;;  %v300_v18 = vrot.slane %v274_v11, 4  ;;  %v278_v22 = vld [vmem:[#allocation6 + $0x1] sm:$0x1] }
  0x62   :  { %2520 = vmatprep.subr.bf16.mxu1 %v2977_v8  ;;  %v302_v19 = vrot.slane %v275_v12, 3  ;;  %v304_v20 = vrot.slane %v276_v13, 2  ;;  %v306_v21 = vrot.slane %v277_v14, 1  ;;  %v279_v23 = vld [vmem:[#allocation6 + $0x9] sm:$0x1]  ;;  %2512 = vmatprep.subr.bf16.mxu0 %v2977_v8  ;;  %v412_v28 = vld [vmem:[#allocation9 + $0x20] sm:$0xff] }
  0x63   :  { %v295_v24 = vsel %vm131_vm0, %v294_v15, %v270_v6  ;;  %v280_v25 = vld [vmem:[#allocation6 + $0x11] sm:$0x1]  ;;  %v281_v26 = vld [vmem:[#allocation6 + $0x19] sm:$0x1]  ;;  %v282_v27 = vld [vmem:[#allocation6 + $0x21] sm:$0x1] }
  0x64   :  { %v297_v29 = vsel %vm134_vm1, %v296_v16, %v295_v24  ;;  %v283_v30 = vld [vmem:[#allocation6 + $0x29] sm:$0x1]  ;;  %v284_v31 = vld [vmem:[#allocation6 + $0x31] sm:$0x1]  ;;  %v285_v32 = vld [vmem:[#allocation6 + $0x39] sm:$0x1] }
  0x65   :  { %2522 = vmatpush3.bf16.msra.mxu1 %v2977_v8  ;;  %v299_v33 = vsel %vm137_vm2, %v298_v17, %v297_v29  ;;  %v316_v34 = vrot.slane %v279_v23, 7  ;;  %v318_v35 = vrot.slane %v280_v25, 6  ;;  %v320_v36 = vrot.slane %v281_v26, 5  ;;  %2514 = vmatpush3.bf16.msra.mxu0 %v2977_v8  ;;  %v106_v37 = vld [vmem:[#allocation3] sm:$0x1]  ;;  %v413_v38 = vld [vmem:[#allocation9 + $0x28] sm:$0xff] }
  0x66   :  { %v301_v39 = vsel %vm140_vm3, %v300_v18, %v299_v33  ;;  %v322_v40 = vrot.slane %v282_v27, 4  ;;  %v324_v41 = vrot.slane %v283_v30, 3  ;;  %v326_v42 = vrot.slane %v284_v31, 2  ;;  %v107_v43 = vld [vmem:[#allocation3 + $0x8] sm:$0x1]  ;;  %2540 = vmatprep.subr.bf16.mxu1 %v2975_v4  ;;  %s2827_s15 = smov [#allocation12]  }
  0x67   :  { %v303_v44 = vsel %vm143_vm4, %v302_v19, %v301_v39  ;;  %v317_v45 = vsel %vm131_vm0, %v316_v34, %v278_v22  ;;  %v328_v46 = vrot.slane %v285_v32, 1  ;;  %v108_v47 = vld [vmem:[#allocation3 + $0x10] sm:$0x1]  ;;  %v109_v48 = vld [vmem:[#allocation3 + $0x18] sm:$0x1]  ;;  %v130_v49 = vrot.slane %v107_v43, 7 }
  0x68   :  { %v305_v50 = vsel %vm146_vm5, %v304_v20, %v303_v44  ;;  %v319_v51 = vsel %vm134_vm1, %v318_v35, %v317_v45  ;;  %v110_v52 = vld [vmem:[#allocation3 + $0x20] sm:$0x1]  ;;  %v111_v53 = vld [vmem:[#allocation3 + $0x28] sm:$0x1]  ;;  %v112_v54 = vld [vmem:[#allocation3 + $0x30] sm:$0x1]  ;;  %v2996_v55 = vpack.c.bf16 %v413_v38, %v412_v28 }
  0x69   :  { %v307_v56 = vsel %vm149_vm6, %v306_v21, %v305_v50  ;;  %v321_v57 = vsel %vm137_vm2, %v320_v36, %v319_v51  ;;  %v113_v58 = vld [vmem:[#allocation3 + $0x38] sm:$0x1]  ;;  %v132_v59 = vsel %vm131_vm0, %v130_v49, %v106_v37  ;;  %v133_v60 = vrot.slane %v108_v47, 6  ;;  %v114_v1 = vld [vmem:[#allocation6] sm:$0x1]  ;;  %s2151_s17 = sshll.u32 %s2827_s15, 4  ;;  %s2152_s17 = int_to_ptr.vmem [resolvable:$true] %s2151_s17 }
  0x6a   :  { %2326 = vmatprep.mubr.msk.f32.mxu1 %vm184_vm7, %v307_v56  ;;  %v323_v61 = vsel %vm140_vm3, %v322_v40, %v321_v57  ;;  %v136_v62 = vrot.slane %v109_v48, 5  ;;  %v139_v63 = vrot.slane %v110_v52, 4  ;;  %v142_v0 = vrot.slane %v111_v53, 3  ;;  %v115_v2 = vld [vmem:[#allocation6 + $0x8] sm:$0x1]  ;;  %2524 = vmatprep.subr.bf16.mxu0 %v2996_v55  ;;  %s2791_s19 = scalar_lea.vmem %s2152_s17, 32  ;;  %p2792_p13 = scmp.lt.s32.totalorder %s2152_s17, %s2152_s17 }
  0x6b   :  { %v325_v3 = vsel %vm143_vm4, %v324_v41, %v323_v61  ;;  %v135_v5 = vsel %vm134_vm1, %v133_v60, %v132_v59  ;;  %v145_v6 = vrot.slane %v112_v54, 2  ;;  %v148_v7 = vrot.slane %v113_v58, 1  ;;  %v116_v9 = vld [vmem:[#allocation6 + $0x10] sm:$0x1]  ;;  %v117_v10 = vld [vmem:[#allocation6 + $0x18] sm:$0x1] }
  0x6c   :  { %v327_v11 = vsel %vm146_vm5, %v326_v42, %v325_v3  ;;  %v138_v12 = vsel %vm137_vm2, %v136_v62, %v135_v5  ;;  %v118_v13 = vld [vmem:[#allocation6 + $0x20] sm:$0x1]  ;;  %v119_v14 = vld [vmem:[#allocation6 + $0x28] sm:$0x1]  ;;  %v120_v15 = vld [vmem:[#allocation6 + $0x30] sm:$0x1] }
  0x6d   :  { %v329_v16 = vsel %vm149_vm6, %v328_v46, %v327_v11  ;;  %v141_v17 = vsel %vm140_vm3, %v139_v63, %v138_v12  ;;  %v121_v18 = vld [vmem:[#allocation6 + $0x38] sm:$0x1]  ;;  %v159_v19 = vrot.slane %v115_v2, 7  ;;  %v161_v20 = vrot.slane %v116_v9, 6  ;;  %v578_v25 = vld [vmem:[#allocation3 + $0x2] sm:$0x1] }
  0x6e   :  { %2327 = vmatmul.mubr.msk.f32.vlgmr.msra.gmra.mrb[0].mxu1 %vm184_vm7, %v329_v16  ;;  %v144_v21 = vsel %vm143_vm4, %v142_v0, %v141_v17  ;;  %v163_v22 = vrot.slane %v117_v10, 5  ;;  %v165_v23 = vrot.slane %v118_v13, 4  ;;  %v167_v24 = vrot.slane %v119_v14, 3  ;;  %v579_v26 = vld [vmem:[#allocation3 + $0xa] sm:$0x1] }
  0x6f   :  { %v147_v27 = vsel %vm146_vm5, %v145_v6, %v144_v21  ;;  %v160_v28 = vsel %vm131_vm0, %v159_v19, %v114_v1  ;;  %v169_v29 = vrot.slane %v120_v15, 2  ;;  %v171_v30 = vrot.slane %v121_v18, 1  ;;  %2542 = vmatpush3.bf16.msra.mxu1 %v2975_v4  ;;  %v580_v31 = vld [vmem:[#allocation3 + $0x12] sm:$0x1]  ;;  %v581_v32 = vld [vmem:[#allocation3 + $0x1a] sm:$0x1] }
  0x70   :  { %v150_v33 = vsel %vm149_vm6, %v148_v7, %v147_v27  ;;  %v162_v34 = vsel %vm134_vm1, %v161_v20, %v160_v28  ;;  %2544 = vmatprep.subr.bf16.mxu1 %v2977_v8  ;;  %v582_v35 = vld [vmem:[#allocation3 + $0x22] sm:$0x1]  ;;  %v583_v36 = vld [vmem:[#allocation3 + $0x2a] sm:$0x1]  ;;  %v584_v37 = vld [vmem:[#allocation3 + $0x32] sm:$0x1] }
  0x71   :  { %2315 = vmatprep.mubr.msk.f32.mxu0 %vm184_vm7, %v150_v33  ;;  %v164_v38 = vsel %vm137_vm2, %v163_v22, %v162_v34  ;;  %v585_v39 = vld [vmem:[#allocation3 + $0x3a] sm:$0x1]  ;;  %v602_v40 = vrot.slane %v579_v26, 7  ;;  %v604_v41 = vrot.slane %v580_v31, 6  ;;  %v606_v42 = vrot.slane %v581_v32, 5 }
  0x72   :  { %v166_v43 = vsel %vm140_vm3, %v165_v23, %v164_v38  ;;  %v608_v44 = vrot.slane %v582_v35, 4  ;;  %v610_v45 = vrot.slane %v583_v36, 3  ;;  %v586_v46 = vld [vmem:[#allocation6 + $0x2] sm:$0x1]  ;;  %v612_v49 = vrot.slane %v584_v37, 2 }
  0x73   :  { %v168_v47 = vsel %vm143_vm4, %v167_v24, %v166_v43  ;;  %2546 = vmatpush3.bf16.msra.mxu1 %v2977_v8  ;;  %v603_v48 = vsel %vm131_vm0, %v602_v40, %v578_v25  ;;  %v614_v50 = vrot.slane %v585_v39, 1  ;;  %v587_v51 = vld [vmem:[#allocation6 + $0xa] sm:$0x1]  ;;  %v588_v52 = vld [vmem:[#allocation6 + $0x12] sm:$0x1]  ;;  %vm1978_vm8 = vcmask 523264  }
  0x74   :  { %v170_v53 = vsel %vm146_vm5, %v169_v29, %v168_v47  ;;  %v605_v54 = vsel %vm134_vm1, %v604_v41, %v603_v48  ;;  %v589_v56 = vld [vmem:[#allocation6 + $0x1a] sm:$0x1]  ;;  %v590_v57 = vld [vmem:[#allocation6 + $0x22] sm:$0x1]  ;;  %v591_v58 = vld [vmem:[#allocation6 + $0x2a] sm:$0x1]  ;;  %2556 = vmatprep.subr.bf16.mxu1 %v2975_v4 }
  0x75   :  { %v172_v59 = vsel %vm149_vm6, %v171_v30, %v170_v53  ;;  %v607_v60 = vsel %vm137_vm2, %v606_v42, %v605_v54  ;;  %v592_v61 = vld [vmem:[#allocation6 + $0x32] sm:$0x1]  ;;  %v593_v62 = vld [vmem:[#allocation6 + $0x3a] sm:$0x1]  ;;  %v624_v63 = vrot.slane %v587_v51, 7  ;;  %v626_v0 = vrot.slane %v588_v52, 6 }
  0x76   :  { %2316 = vmatmul.mubr.msk.f32.vlgmr.msra.gmra.mrb[0].mxu0 %vm184_vm7, %v172_v59  ;;  %v609_v1 = vsel %vm140_vm3, %v608_v44, %v607_v60  ;;  %v628_v2 = vrot.slane %v589_v56, 5  ;;  %v630_v3 = vrot.slane %v590_v57, 4  ;;  %v632_v5 = vrot.slane %v591_v58, 3  ;;  %v807_v6 = vld [vmem:[#allocation3 + $0x3] sm:$0x1] }
  0x77   :  { %v611_v7 = vsel %vm143_vm4, %v610_v45, %v609_v1  ;;  %v625_v9 = vsel %vm131_vm0, %v624_v63, %v586_v46  ;;  %v634_v10 = vrot.slane %v592_v61, 2  ;;  %v636_v11 = vrot.slane %v593_v62, 1  ;;  %v808_v12 = vld [vmem:[#allocation3 + $0xb] sm:$0x1]  ;;  %v809_v13 = vld [vmem:[#allocation3 + $0x13] sm:$0x1]  ;;  %2526 = vmatpush3.bf16.msra.mxu0 %v2996_v55 }
  0x78   :  { %v613_v14 = vsel %vm146_vm5, %v612_v49, %v611_v7  ;;  %v627_v15 = vsel %vm134_vm1, %v626_v0, %v625_v9  ;;  %v810_v16 = vld [vmem:[#allocation3 + $0x1b] sm:$0x1]  ;;  %v811_v17 = vld [vmem:[#allocation3 + $0x23] sm:$0x1]  ;;  %v812_v18 = vld [vmem:[#allocation3 + $0x2b] sm:$0x1] }
  0x79   :  { %v615_v19 = vsel %vm149_vm6, %v614_v50, %v613_v14  ;;  %v629_v20 = vsel %vm137_vm2, %v628_v2, %v627_v15  ;;  %v813_v21 = vld [vmem:[#allocation3 + $0x33] sm:$0x1]  ;;  %v814_v22 = vld [vmem:[#allocation3 + $0x3b] sm:$0x1]  ;;  %v831_v23 = vrot.slane %v808_v12, 7  ;;  %v833_v24 = vrot.slane %v809_v13, 6 }
  0x7a   :  { %2359 = vmatprep.mubr.msk.f32.mxu1 %vm184_vm7, %v615_v19  ;;  %v631_v25 = vsel %vm140_vm3, %v630_v3, %v629_v20  ;;  %v835_v55 = vrot.slane %v810_v16, 5  ;;  %v837_v26 = vrot.slane %v811_v17, 4  ;;  %v839_v27 = vrot.slane %v812_v18, 3  ;;  %v815_v28 = vld [vmem:[#allocation6 + $0x3] sm:$0x1] }
  0x7b   :  { %v633_v29 = vsel %vm143_vm4, %v632_v5, %v631_v25  ;;  %v832_v30 = vsel %vm131_vm0, %v831_v23, %v807_v6  ;;  %v841_v31 = vrot.slane %v813_v21, 2  ;;  %v843_v32 = vrot.slane %v814_v22, 1  ;;  %v816_v33 = vld [vmem:[#allocation6 + $0xb] sm:$0x1]  ;;  %v817_v34 = vld [vmem:[#allocation6 + $0x13] sm:$0x1] }
  0x7c   :  { %v635_v35 = vsel %vm146_vm5, %v634_v10, %v633_v29  ;;  %v834_v36 = vsel %vm134_vm1, %v833_v24, %v832_v30  ;;  %v818_v37 = vld [vmem:[#allocation6 + $0x1b] sm:$0x1]  ;;  %v819_v38 = vld [vmem:[#allocation6 + $0x23] sm:$0x1]  ;;  %v820_v39 = vld [vmem:[#allocation6 + $0x2b] sm:$0x1] }
  0x7d   :  { %v637_v40 = vsel %vm149_vm6, %v636_v11, %v635_v35  ;;  %v836_v41 = vsel %vm137_vm2, %v835_v55, %v834_v36  ;;  %v821_v42 = vld [vmem:[#allocation6 + $0x33] sm:$0x1]  ;;  %v822_v43 = vld [vmem:[#allocation6 + $0x3b] sm:$0x1]  ;;  %v853_v44 = vrot.slane %v816_v33, 7  ;;  %v855_v45 = vrot.slane %v817_v34, 6 }
  0x7e   :  { %2360 = vmatmul.mubr.msk.f32.vlgmr.msra.gmra.mrb[2].mxu1 %vm184_vm7, %v637_v40  ;;  %v838_v46 = vsel %vm140_vm3, %v837_v26, %v836_v41  ;;  %v857_v47 = vrot.slane %v818_v37, 5  ;;  %v859_v48 = vrot.slane %v819_v38, 4  ;;  %v861_v49 = vrot.slane %v820_v39, 3  ;;  %v1036_v50 = vld [vmem:[#allocation3 + $0x4] sm:$0x1] }
  0x7f   :  { %2558 = vmatpush3.bf16.msra.mxu1 %v2975_v4  ;;  %v840_v51 = vsel %vm143_vm4, %v839_v27, %v838_v46  ;;  %v854_v52 = vsel %vm131_vm0, %v853_v44, %v815_v28  ;;  %v863_v53 = vrot.slane %v821_v42, 2  ;;  %v865_v54 = vrot.slane %v822_v43, 1  ;;  %v1037_v56 = vld [vmem:[#allocation3 + $0xc] sm:$0x1]  ;;  %v1038_v57 = vld [vmem:[#allocation3 + $0x14] sm:$0x1] }
  0x80   :  { %2560 = vmatprep.subr.bf16.mxu1 %v2977_v8  ;;  %v842_v58 = vsel %vm146_vm5, %v841_v31, %v840_v51  ;;  %v856_v59 = vsel %vm134_vm1, %v855_v45, %v854_v52  ;;  %v1039_v60 = vld [vmem:[#allocation3 + $0x1c] sm:$0x1]  ;;  %v1040_v61 = vld [vmem:[#allocation3 + $0x24] sm:$0x1]  ;;  %v1041_v62 = vld [vmem:[#allocation3 + $0x2c] sm:$0x1] }
  0x81   :  { %v844_v63 = vsel %vm149_vm6, %v843_v32, %v842_v58  ;;  %v858_v0 = vsel %vm137_vm2, %v857_v47, %v856_v59  ;;  %v1042_v1 = vld [vmem:[#allocation3 + $0x34] sm:$0x1]  ;;  %v1043_v2 = vld [vmem:[#allocation3 + $0x3c] sm:$0x1]  ;;  %v1060_v3 = vrot.slane %v1037_v56, 7  ;;  %v1062_v5 = vrot.slane %v1038_v57, 6 }
  0x82   :  { %2381 = vmatprep.mubr.msk.f32.mxu1 %vm184_vm7, %v844_v63  ;;  %v860_v6 = vsel %vm140_vm3, %v859_v48, %v858_v0  ;;  %v1064_v7 = vrot.slane %v1039_v60, 5  ;;  %v1066_v9 = vrot.slane %v1040_v61, 4  ;;  %v1068_v10 = vrot.slane %v1041_v62, 3  ;;  %v1044_v11 = vld [vmem:[#allocation6 + $0x4] sm:$0x1] }
  0x83   :  { %2562 = vmatpush3.bf16.msra.mxu1 %v2977_v8  ;;  %v862_v12 = vsel %vm143_vm4, %v861_v49, %v860_v6  ;;  %v1061_v13 = vsel %vm131_vm0, %v1060_v3, %v1036_v50  ;;  %v1070_v14 = vrot.slane %v1042_v1, 2  ;;  %v1072_v15 = vrot.slane %v1043_v2, 1  ;;  %v1045_v16 = vld [vmem:[#allocation6 + $0xc] sm:$0x1]  ;;  %v1046_v17 = vld [vmem:[#allocation6 + $0x14] sm:$0x1] }
  0x84   :  { %v864_v18 = vsel %vm146_vm5, %v863_v53, %v862_v12  ;;  %2572 = vmatprep.subr.bf16.mxu1 %v2975_v4  ;;  %v1063_v19 = vsel %vm134_vm1, %v1062_v5, %v1061_v13  ;;  %v1047_v20 = vld [vmem:[#allocation6 + $0x1c] sm:$0x1]  ;;  %v1048_v21 = vld [vmem:[#allocation6 + $0x24] sm:$0x1]  ;;  %v1049_v22 = vld [vmem:[#allocation6 + $0x2c] sm:$0x1] }
  0x85   :  { %v866_v23 = vsel %vm149_vm6, %v865_v54, %v864_v18  ;;  %v1065_v24 = vsel %vm137_vm2, %v1064_v7, %v1063_v19  ;;  %v1050_v25 = vld [vmem:[#allocation6 + $0x34] sm:$0x1]  ;;  %v1051_v55 = vld [vmem:[#allocation6 + $0x3c] sm:$0x1]  ;;  %v1082_v26 = vrot.slane %v1045_v16, 7  ;;  %v1084_v27 = vrot.slane %v1046_v17, 6 }
  0x86   :  { %2382 = vmatmul.mubr.msk.f32.vlgmr.msra.gmra.mrb[4].mxu1 %vm184_vm7, %v866_v23  ;;  %v1067_v28 = vsel %vm140_vm3, %v1066_v9, %v1065_v24  ;;  %v1086_v29 = vrot.slane %v1047_v20, 5  ;;  %v1088_v30 = vrot.slane %v1048_v21, 4  ;;  %v1090_v31 = vrot.slane %v1049_v22, 3  ;;  %v1265_v32 = vld [vmem:[#allocation3 + $0x5] sm:$0x1] }
  0x87   :  { %2574 = vmatpush3.bf16.msra.mxu1 %v2975_v4  ;;  %v1069_v33 = vsel %vm143_vm4, %v1068_v10, %v1067_v28  ;;  %v1083_v34 = vsel %vm131_vm0, %v1082_v26, %v1044_v11  ;;  %v1092_v35 = vrot.slane %v1050_v25, 2  ;;  %v1094_v36 = vrot.slane %v1051_v55, 1  ;;  %v1266_v37 = vld [vmem:[#allocation3 + $0xd] sm:$0x1]  ;;  %v1267_v38 = vld [vmem:[#allocation3 + $0x15] sm:$0x1] }
  0x88   :  { %2576 = vmatprep.subr.bf16.mxu1 %v2977_v8  ;;  %v1071_v39 = vsel %vm146_vm5, %v1070_v14, %v1069_v33  ;;  %v1085_v40 = vsel %vm134_vm1, %v1084_v27, %v1083_v34  ;;  %v1268_v41 = vld [vmem:[#allocation3 + $0x1d] sm:$0x1]  ;;  %v1269_v42 = vld [vmem:[#allocation3 + $0x25] sm:$0x1]  ;;  %v1270_v43 = vld [vmem:[#allocation3 + $0x2d] sm:$0x1] }
  0x89   :  { %v1073_v44 = vsel %vm149_vm6, %v1072_v15, %v1071_v39  ;;  %v1087_v45 = vsel %vm137_vm2, %v1086_v29, %v1085_v40  ;;  %v1271_v46 = vld [vmem:[#allocation3 + $0x35] sm:$0x1]  ;;  %v1272_v47 = vld [vmem:[#allocation3 + $0x3d] sm:$0x1]  ;;  %v1289_v48 = vrot.slane %v1266_v37, 7  ;;  %v1291_v49 = vrot.slane %v1267_v38, 6 }
  0x8a   :  { %2403 = vmatprep.mubr.msk.f32.mxu1 %vm184_vm7, %v1073_v44  ;;  %v1089_v50 = vsel %vm140_vm3, %v1088_v30, %v1087_v45  ;;  %v1293_v51 = vrot.slane %v1268_v41, 5  ;;  %v1295_v52 = vrot.slane %v1269_v42, 4  ;;  %v1297_v53 = vrot.slane %v1270_v43, 3  ;;  %v1273_v54 = vld [vmem:[#allocation6 + $0x5] sm:$0x1] }
  0x8b   :  { %2578 = vmatpush3.bf16.msra.mxu1 %v2977_v8  ;;  %v1091_v56 = vsel %vm143_vm4, %v1090_v31, %v1089_v50  ;;  %v1290_v57 = vsel %vm131_vm0, %v1289_v48, %v1265_v32  ;;  %v1299_v58 = vrot.slane %v1271_v46, 2  ;;  %v1301_v59 = vrot.slane %v1272_v47, 1  ;;  %v1274_v60 = vld [vmem:[#allocation6 + $0xd] sm:$0x1]  ;;  %v1275_v61 = vld [vmem:[#allocation6 + $0x15] sm:$0x1] }
  0x8c   :  { %v1093_v62 = vsel %vm146_vm5, %v1092_v35, %v1091_v56  ;;  %2588 = vmatprep.subr.bf16.mxu1 %v2975_v4  ;;  %v1292_v63 = vsel %vm134_vm1, %v1291_v49, %v1290_v57  ;;  %v1276_v0 = vld [vmem:[#allocation6 + $0x1d] sm:$0x1]  ;;  %v1277_v1 = vld [vmem:[#allocation6 + $0x25] sm:$0x1]  ;;  %v1278_v2 = vld [vmem:[#allocation6 + $0x2d] sm:$0x1] }
  0x8d   :  { %v1095_v3 = vsel %vm149_vm6, %v1094_v36, %v1093_v62  ;;  %v1294_v5 = vsel %vm137_vm2, %v1293_v51, %v1292_v63  ;;  %v1279_v6 = vld [vmem:[#allocation6 + $0x35] sm:$0x1]  ;;  %v1280_v7 = vld [vmem:[#allocation6 + $0x3d] sm:$0x1]  ;;  %v1311_v9 = vrot.slane %v1274_v60, 7  ;;  %v1313_v10 = vrot.slane %v1275_v61, 6 }
  0x8e   :  { %2404 = vmatmul.mubr.msk.f32.vlgmr.msra.gmra.mrb[6].mxu1 %vm184_vm7, %v1095_v3  ;;  %v1296_v11 = vsel %vm140_vm3, %v1295_v52, %v1294_v5  ;;  %v1315_v12 = vrot.slane %v1276_v0, 5  ;;  %v1317_v13 = vrot.slane %v1277_v1, 4  ;;  %v1319_v14 = vrot.slane %v1278_v2, 3  ;;  %v1494_v15 = vld [vmem:[#allocation3 + $0x6] sm:$0x1] }
  0x8f   :  { %2590 = vmatpush3.bf16.msra.mxu1 %v2975_v4  ;;  %v1298_v16 = vsel %vm143_vm4, %v1297_v53, %v1296_v11  ;;  %v1312_v17 = vsel %vm131_vm0, %v1311_v9, %v1273_v54  ;;  %v1321_v18 = vrot.slane %v1279_v6, 2  ;;  %v1323_v19 = vrot.slane %v1280_v7, 1  ;;  %v1495_v20 = vld [vmem:[#allocation3 + $0xe] sm:$0x1]  ;;  %v1496_v21 = vld [vmem:[#allocation3 + $0x16] sm:$0x1] }
  0x90   :  { %2592 = vmatprep.subr.bf16.mxu1 %v2977_v8  ;;  %v1300_v22 = vsel %vm146_vm5, %v1299_v58, %v1298_v16  ;;  %v1314_v23 = vsel %vm134_vm1, %v1313_v10, %v1312_v17  ;;  %v1497_v24 = vld [vmem:[#allocation3 + $0x1e] sm:$0x1]  ;;  %v1498_v25 = vld [vmem:[#allocation3 + $0x26] sm:$0x1]  ;;  %v1499_v55 = vld [vmem:[#allocation3 + $0x2e] sm:$0x1] }
  0x91   :  { %v1302_v26 = vsel %vm149_vm6, %v1301_v59, %v1300_v22  ;;  %v1316_v27 = vsel %vm137_vm2, %v1315_v12, %v1314_v23  ;;  %v1500_v28 = vld [vmem:[#allocation3 + $0x36] sm:$0x1]  ;;  %v1501_v29 = vld [vmem:[#allocation3 + $0x3e] sm:$0x1]  ;;  %v1518_v30 = vrot.slane %v1495_v20, 7  ;;  %v1520_v31 = vrot.slane %v1496_v21, 6 }
  0x92   :  { %2425 = vmatprep.mubr.msk.f32.mxu1 %vm184_vm7, %v1302_v26  ;;  %v1318_v32 = vsel %vm140_vm3, %v1317_v13, %v1316_v27  ;;  %v1522_v33 = vrot.slane %v1497_v24, 5  ;;  %v1524_v34 = vrot.slane %v1498_v25, 4  ;;  %v1526_v35 = vrot.slane %v1499_v55, 3  ;;  %v1502_v36 = vld [vmem:[#allocation6 + $0x6] sm:$0x1] }
  0x93   :  { %2594 = vmatpush3.bf16.msra.mxu1 %v2977_v8  ;;  %v1320_v37 = vsel %vm143_vm4, %v1319_v14, %v1318_v32  ;;  %v1519_v38 = vsel %vm131_vm0, %v1518_v30, %v1494_v15  ;;  %v1528_v39 = vrot.slane %v1500_v28, 2  ;;  %v1530_v40 = vrot.slane %v1501_v29, 1  ;;  %v1503_v41 = vld [vmem:[#allocation6 + $0xe] sm:$0x1]  ;;  %v1504_v42 = vld [vmem:[#allocation6 + $0x16] sm:$0x1] }
  0x94   :  { %v1322_v43 = vsel %vm146_vm5, %v1321_v18, %v1320_v37  ;;  %2604 = vmatprep.subr.bf16.mxu1 %v2975_v4  ;;  %v1521_v44 = vsel %vm134_vm1, %v1520_v31, %v1519_v38  ;;  %v1505_v45 = vld [vmem:[#allocation6 + $0x1e] sm:$0x1]  ;;  %v1506_v46 = vld [vmem:[#allocation6 + $0x26] sm:$0x1]  ;;  %v1507_v47 = vld [vmem:[#allocation6 + $0x2e] sm:$0x1] }
  0x95   :  { %v1324_v48 = vsel %vm149_vm6, %v1323_v19, %v1322_v43  ;;  %v1523_v49 = vsel %vm137_vm2, %v1522_v33, %v1521_v44  ;;  %v1508_v50 = vld [vmem:[#allocation6 + $0x36] sm:$0x1]  ;;  %v1509_v51 = vld [vmem:[#allocation6 + $0x3e] sm:$0x1]  ;;  %v1540_v52 = vrot.slane %v1503_v41, 7  ;;  %v1542_v53 = vrot.slane %v1504_v42, 6 }
  0x96   :  { %2426 = vmatmul.mubr.msk.f32.vlgmr.msra.gmra.mrb[8].mxu1 %vm184_vm7, %v1324_v48  ;;  %v1525_v54 = vsel %vm140_vm3, %v1524_v34, %v1523_v49  ;;  %v1544_v56 = vrot.slane %v1505_v45, 5  ;;  %v1546_v57 = vrot.slane %v1506_v46, 4  ;;  %v1548_v58 = vrot.slane %v1507_v47, 3  ;;  %v1723_v59 = vld [vmem:[#allocation3 + $0x7] sm:$0x1] }
  0x97   :  { %2606 = vmatpush3.bf16.msra.mxu1 %v2975_v4  ;;  %v1527_v60 = vsel %vm143_vm4, %v1526_v35, %v1525_v54  ;;  %v1541_v61 = vsel %vm131_vm0, %v1540_v52, %v1502_v36  ;;  %v1550_v62 = vrot.slane %v1508_v50, 2  ;;  %v1552_v63 = vrot.slane %v1509_v51, 1  ;;  %v1724_v0 = vld [vmem:[#allocation3 + $0xf] sm:$0x1]  ;;  %v1725_v1 = vld [vmem:[#allocation3 + $0x17] sm:$0x1] }
  0x98   :  { %2608 = vmatprep.subr.bf16.mxu1 %v2977_v8  ;;  %v1529_v2 = vsel %vm146_vm5, %v1528_v39, %v1527_v60  ;;  %v1543_v3 = vsel %vm134_vm1, %v1542_v53, %v1541_v61  ;;  %v1726_v5 = vld [vmem:[#allocation3 + $0x1f] sm:$0x1]  ;;  %v1727_v6 = vld [vmem:[#allocation3 + $0x27] sm:$0x1]  ;;  %v1728_v7 = vld [vmem:[#allocation3 + $0x2f] sm:$0x1] }
  0x99   :  { %v1531_v9 = vsel %vm149_vm6, %v1530_v40, %v1529_v2  ;;  %v1545_v10 = vsel %vm137_vm2, %v1544_v56, %v1543_v3  ;;  %v1729_v11 = vld [vmem:[#allocation3 + $0x37] sm:$0x1]  ;;  %v1730_v12 = vld [vmem:[#allocation3 + $0x3f] sm:$0x1]  ;;  %v1747_v13 = vrot.slane %v1724_v0, 7  ;;  %v1749_v14 = vrot.slane %v1725_v1, 6 }
  0x9a   :  { %2447 = vmatprep.mubr.msk.f32.mxu1 %vm184_vm7, %v1531_v9  ;;  %v1547_v15 = vsel %vm140_vm3, %v1546_v57, %v1545_v10  ;;  %v1751_v16 = vrot.slane %v1726_v5, 5  ;;  %v1753_v17 = vrot.slane %v1727_v6, 4  ;;  %v1755_v18 = vrot.slane %v1728_v7, 3  ;;  %v1731_v19 = vld [vmem:[#allocation6 + $0x7] sm:$0x1]  ;;  %v414_v51 = vld [vmem:[#allocation9 + $0x30] sm:$0xff] }
  0x9b   :  { %2610 = vmatpush3.bf16.msra.mxu1 %v2977_v8  ;;  %v1549_v20 = vsel %vm143_vm4, %v1548_v58, %v1547_v15  ;;  %v1748_v21 = vsel %vm131_vm0, %v1747_v13, %v1723_v59  ;;  %v1757_v22 = vrot.slane %v1729_v11, 2  ;;  %v1759_v23 = vrot.slane %v1730_v12, 1  ;;  %v1732_v24 = vld [vmem:[#allocation6 + $0xf] sm:$0x1]  ;;  %v1733_v25 = vld [vmem:[#allocation6 + $0x17] sm:$0x1] }
  0x9c   :  { %v1551_v55 = vsel %vm146_vm5, %v1550_v62, %v1549_v20  ;;  %2620 = vmatprep.subr.bf16.mxu1 %v2975_v4  ;;  %v1750_v26 = vsel %vm134_vm1, %v1749_v14, %v1748_v21  ;;  %v1734_v27 = vld [vmem:[#allocation6 + $0x1f] sm:$0x1]  ;;  %v1735_v28 = vld [vmem:[#allocation6 + $0x27] sm:$0x1]  ;;  %v1736_v29 = vld [vmem:[#allocation6 + $0x2f] sm:$0x1] }
  0x9d   :  { %v1553_v30 = vsel %vm149_vm6, %v1552_v63, %v1551_v55  ;;  %v1752_v31 = vsel %vm137_vm2, %v1751_v16, %v1750_v26  ;;  %v1737_v32 = vld [vmem:[#allocation6 + $0x37] sm:$0x1]  ;;  %v1769_v33 = vrot.slane %v1732_v24, 7  ;;  %v1771_v34 = vrot.slane %v1733_v25, 6  ;;  %v1738_v36 = vld [vmem:[#allocation6 + $0x3f] sm:$0x1] }
  0x9e   :  { %2448 = vmatmul.mubr.msk.f32.vlgmr.msra.gmra.mrb[10].mxu1 %vm184_vm7, %v1553_v30  ;;  %v1754_v35 = vsel %vm140_vm3, %v1753_v17, %v1752_v31  ;;  %v1773_v37 = vrot.slane %v1734_v27, 5  ;;  %v1775_v38 = vrot.slane %v1735_v28, 4  ;;  %v1777_v41 = vrot.slane %v1736_v29, 3  ;;  %v415_v52 = vld [vmem:[#allocation9 + $0x38] sm:$0xff]  ;;  %v266_v54 = vld [vmem:[#allocation9] sm:$0xff]  ;;  %v267_v56 = vld [vmem:[#allocation9 + $0x8] sm:$0xff] }
  0x9f   :  { %2622 = vmatpush3.bf16.msra.mxu1 %v2975_v4  ;;  %v1756_v39 = vsel %vm143_vm4, %v1755_v18, %v1754_v35  ;;  %v1770_v40 = vsel %vm131_vm0, %v1769_v33, %v1731_v19  ;;  %v1779_v44 = vrot.slane %v1737_v32, 2  ;;  %v1781_v47 = vrot.slane %v1738_v36, 1  ;;  %v1963_v58 = vld [vmem:[#allocation11] sm:$0xff]  ;;  %v1964_v59 = vld [vmem:[#allocation11 + $0x8] sm:$0xff]  ;;  %v1966_v61 = vld [vmem:[#allocation11 + $0x18] sm:$0xff] }
  0xa0   :  { %2624 = vmatprep.subr.bf16.mxu1 %v2977_v8  ;;  %v1758_v42 = vsel %vm146_vm5, %v1757_v22, %v1756_v39  ;;  %v1772_v43 = vsel %vm134_vm1, %v1771_v34, %v1770_v40  ;;  %v2527_v53 = vpack.c.bf16 %v415_v52, %v414_v51  ;;  %v2531_v57 = vpack.c.bf16 %v267_v56, %v266_v54  ;;  %v1967_v63 = vld [vmem:[#allocation11 + $0x20] sm:$0xff]  ;;  %v1968_v0 = vld [vmem:[#allocation11 + $0x28] sm:$0xff]  ;;  %v3146_v2 = vld [vmem:[%s3204_s3] ss:$0 sm:$0xff] }
  0xa1   :  { %v1760_v45 = vsel %vm149_vm6, %v1759_v23, %v1758_v42  ;;  %v1774_v46 = vsel %vm137_vm2, %v1773_v37, %v1772_v43  ;;  %v2635_v60 = vpack.c.bf16 %v1964_v59, %v1963_v58  ;;  %v2643_v1 = vpack.c.bf16 %v1968_v0, %v1967_v63  ;;  %v268_v9 = vld [vmem:[#allocation9 + $0x10] sm:$0xff]  ;;  %v269_v10 = vld [vmem:[#allocation9 + $0x18] sm:$0xff]  ;;  %v720_v14 = vld [vmem:[#allocation9 + $0x40] sm:$0xff] }
  0xa2   :  { %2469 = vmatprep.mubr.msk.f32.mxu1 %vm184_vm7, %v1760_v45  ;;  %v1776_v4 = vsel %vm140_vm3, %v1775_v38, %v1774_v46  ;;  %2528 = vmatprep.subr.bf16.mxu0 %v2527_v53  ;;  %v2535_v13 = vpack.c.bf16 %v269_v10, %v268_v9  ;;  %v721_v15 = vld [vmem:[#allocation9 + $0x48] sm:$0xff]  ;;  %v722_v21 = vld [vmem:[#allocation9 + $0x50] sm:$0xff]  ;;  %v723_v22 = vld [vmem:[#allocation9 + $0x58] sm:$0xff]  ;;  %vm2825_vm9 = vmmov 0   ;;  %vm2143_vm10 = vcmask 57344  }
  0xa3   :  { %2626 = vmatpush3.bf16.msra.mxu1 %v2977_v8  ;;  %v1778_v48 = vsel %vm143_vm4, %v1777_v41, %v1776_v4  ;;  %2530 = vmatpush3.bf16.msra.mxu0 %v2527_v53  ;;  %v1965_v8 = vld [vmem:[#allocation11 + $0x10] sm:$0xff]  ;;  %v2547_v19 = vpack.c.bf16 %v721_v15, %v720_v14  ;;  %v2551_v25 = vpack.c.bf16 %v723_v22, %v722_v21  ;;  %v949_v55 = vld [vmem:[#allocation9 + $0x60] sm:$0xff]  ;;  %v950_v26 = vld [vmem:[#allocation9 + $0x68] sm:$0xff] }
  0xa4   :  { %v1780_v49 = vsel %vm146_vm5, %v1779_v44, %v1778_v48  ;;  %2532 = vmatprep.subr.bf16.mxu0 %v2531_v57  ;;  %v2639_v62 = vpack.c.bf16 %v1966_v61, %v1965_v8  ;;  %2636 = vmatprep.subr.bf16.mxu1 %v2635_v60  ;;  %v2563_v30 = vpack.c.bf16 %v950_v26, %v949_v55  ;;  %v951_v32 = vld [vmem:[#allocation9 + $0x70] sm:$0xff]  ;;  %v952_v33 = vld [vmem:[#allocation9 + $0x78] sm:$0xff]  ;;  %v1178_v37 = vld [vmem:[#allocation9 + $0x80] sm:$0xff] }
  0xa5   :  { %v1782_v50 = vsel %vm149_vm6, %v1781_v47, %v1780_v49  ;;  %v2567_v36 = vpack.c.bf16 %v952_v33, %v951_v32  ;;  %v1179_v38 = vld [vmem:[#allocation9 + $0x88] sm:$0xff]  ;;  %v1180_v44 = vld [vmem:[#allocation9 + $0x90] sm:$0xff]  ;;  %v1181_v45 = vld [vmem:[#allocation9 + $0x98] sm:$0xff] }
  0xa6   :  { %2470 = vmatmul.mubr.msk.f32.vlgmr.msra.gmra.mrb[12].mxu1 %vm184_vm7, %v1782_v50  ;;  %v2579_v42 = vpack.c.bf16 %v1179_v38, %v1178_v37  ;;  %v2583_v4 = vpack.c.bf16 %v1181_v45, %v1180_v44  ;;  %v1407_v48 = vld [vmem:[#allocation9 + $0xa0] sm:$0xff]  ;;  %v1408_v49 = vld [vmem:[#allocation9 + $0xa8] sm:$0xff]  ;;  %v1409_v56 = vld [vmem:[#allocation9 + $0xb0] sm:$0xff]  ;;  %v2824_v37 = vmov 0.0  }
  0xa7   :  { %2638 = vmatpush3.bf16.msra.mxu1 %v2635_v60  ;;  %v2595_v53 = vpack.c.bf16 %v1408_v49, %v1407_v48  ;;  %v1636_v60 = vld [vmem:[#allocation9 + $0xc0] sm:$0xff]  ;;  %v1637_v61 = vld [vmem:[#allocation9 + $0xc8] sm:$0xff]  ;;  %v2063_v38 = vld [vmem:[#allocation2] sm:$0x1] }
  0xa8   :  { %2640 = vmatprep.subr.bf16.mxu1 %v2639_v62 }
  0xab   :  { %2642 = vmatpush3.bf16.msra.mxu1 %v2639_v62 }
  0xac   :  { %2644 = vmatprep.subr.bf16.mxu1 %v2643_v1 }
  0xaf   :  { %2646 = vmatpush3.bf16.msra.mxu1 %v2643_v1  ;;  %v2611_v1 = vpack.c.bf16 %v1637_v61, %v1636_v60 }
 0x141   :  { %v2328_v3 = vpop.f32.mrb[0].mxu1 }
 0x142   :  { %v406_v5 = vadd.f32 %v2328_v3, %v3146_v2  ;;  %v400_v6 = vpop.f32.mrb[1].mxu1 }
 0x143   :  { %v401_v7 = vadd.f32 %v3146_v2, %v400_v6  ;;  %v1639_v6 = vld [vmem:[#allocation9 + $0xd8] sm:$0xff] }
 0x144   :  { %v410_v12 = vmax.f32 %v406_v5, 0.0  ;;  %v1638_v5 = vld [vmem:[#allocation9 + $0xd0] sm:$0xff] }
 0x145   :  { %v409_v11 = vmax.f32 %v401_v7, 0.0  ;;  %v2615_v10 = vpack.c.bf16 %v1639_v6, %v1638_v5 }
 0x147   :  { %2337 = vmatprep.mubr.msk.f32.mxu0 %vm184_vm7, %v409_v11  ;;  %v1865_v11 = vld [vmem:[#allocation9 + $0xe0] sm:$0xff] }
 0x148   :  { %2338 = vmatmul.mubr.msk.f32.vlgmr.msra.gmra.mrb[2].mxu0 %vm184_vm7, %v410_v12  ;;  %v1866_v12 = vld [vmem:[#allocation9 + $0xe8] sm:$0xff] }
 0x149   :  { %v2317_v16 = vpop.f32.mrb[0].mxu0  ;;  %2534 = vmatpush3.bf16.msra.mxu0 %v2531_v57  ;;  %v1410_v57 = vld [vmem:[#allocation9 + $0xb8] sm:$0xff] }
 0x14a   :  { %v261_v17 = vadd.f32 %v2317_v16, %v3146_v2  ;;  %v255_v18 = vpop.f32.mrb[1].mxu0  ;;  %2536 = vmatprep.subr.bf16.mxu0 %v2535_v13  ;;  %v2599_v8 = vpack.c.bf16 %v1410_v57, %v1409_v56  ;;  %v2627_v16 = vpack.c.bf16 %v1866_v12, %v1865_v11 }
 0x14b   :  { %v256_v20 = vadd.f32 %v3146_v2, %v255_v18  ;;  %v1867_v18 = vld [vmem:[#allocation9 + $0xf0] sm:$0xff] }
 0x14c   :  { %v265_v24 = vmax.f32 %v261_v17, 0.0 }
 0x14d   :  { %v264_v23 = vmax.f32 %v256_v20, 0.0  ;;  %2538 = vmatpush3.bf16.msra.mxu0 %v2535_v13 }
 0x14e   :  { %2548 = vmatprep.subr.bf16.mxu0 %v2547_v19 }
 0x14f   :  { %2348 = vmatprep.mubr.msk.f32.mxu0 %vm184_vm7, %v264_v23 }
 0x150   :  { %2349 = vmatmul.mubr.msk.f32.vlgmr.msra.gmra.mrb[2].mxu0 %vm184_vm7, %v265_v24 }
 0x151   :  { %v2361_v27 = vpop.f32.mrb[2].mxu1  ;;  %2550 = vmatpush3.bf16.msra.mxu0 %v2547_v19  ;;  %v1868_v19 = vld [vmem:[#allocation9 + $0xf8] sm:$0xff] }
 0x152   :  { %v714_v28 = vadd.f32 %v2361_v27, %v3146_v2  ;;  %v708_v29 = vpop.f32.mrb[3].mxu1  ;;  %2552 = vmatprep.subr.bf16.mxu0 %v2551_v25  ;;  %v2631_v22 = vpack.c.bf16 %v1868_v19, %v1867_v18 }
 0x153   :  { %v709_v31 = vadd.f32 %v3146_v2, %v708_v29  ;;  %v1970_v29 = vld [vmem:[#allocation11 + $0x38] sm:$0xff] }
 0x154   :  { %v718_v35 = vmax.f32 %v714_v28, 0.0  ;;  %v1969_v28 = vld [vmem:[#allocation11 + $0x30] sm:$0xff] }
 0x155   :  { %v717_v34 = vmax.f32 %v709_v31, 0.0  ;;  %2554 = vmatpush3.bf16.msra.mxu0 %v2551_v25  ;;  %v2195_v31 = vld [vmem:[%s3206_s5] ss:$0 sm:$0xff] }
 0x156   :  { %2564 = vmatprep.subr.bf16.mxu0 %v2563_v30 }
 0x157   :  { %2370 = vmatprep.mubr.msk.f32.mxu0 %vm184_vm7, %v717_v34 }
 0x158   :  { %2371 = vmatmul.mubr.msk.f32.vlgmr.msra.gmra.mrb[2].mxu0 %vm184_vm7, %v718_v35 }
 0x159   :  { %v2383_v39 = vpop.f32.mrb[4].mxu1  ;;  %2566 = vmatpush3.bf16.msra.mxu0 %v2563_v30  ;;  %v2647_v30 = vpack.c.bf16 %v1970_v29, %v1969_v28 }
 0x15a   :  { %v943_v40 = vadd.f32 %v2383_v39, %v3146_v2  ;;  %v937_v41 = vpop.f32.mrb[5].mxu1  ;;  %2568 = vmatprep.subr.bf16.mxu0 %v2567_v36  ;;  %v2826_v39 = vmov 0  }
 0x15b   :  { %v938_v43 = vadd.f32 %v3146_v2, %v937_v41  ;;  %2648 = vmatprep.subr.bf16.mxu1 %v2647_v30  ;;  %2676 = vset.pattern.permute.xlu0 %v2826_v39 }
 0x15c   :  { %v947_v47 = vmax.f32 %v943_v40, 0.0  ;;  %2650 = vmatpush3.bf16.msra.mxu1 %v2647_v30  ;;  %2066 = vperm.xlu0 %2676, %v2063_v38   ;;  %v2196_v40 = vld [vmem:[%s3208_s7] ss:$0 sm:$0xff]  ;;  %s2787_s7 = scalar_lea.vmem %s2152_s17, 16 }
 0x15d   :  { %v946_v46 = vmax.f32 %v938_v43, 0.0  ;;  %2570 = vmatpush3.bf16.msra.mxu0 %v2567_v36  ;;  %p2788_p12 = scmp.ne.s32.totalorder %s2152_s17, %s2787_s7  ;;  %p2793_p0 = scmp.lt.s32.totalorder %s2791_s19, %s2787_s7 }
 0x15e   :  { %2580 = vmatprep.subr.bf16.mxu0 %v2579_v42 }
 0x15f   :  { %2392 = vmatprep.mubr.msk.f32.mxu0 %vm184_vm7, %v946_v46  ;;  %p2794_p1 = por %p2793_p0, %p2792_p13 }
 0x160   :  { %2393 = vmatmul.mubr.msk.f32.vlgmr.msra.gmra.mrb[2].mxu0 %vm184_vm7, %v947_v47  ;;  %v2062_v47 = vld [vmem:[%s3209_s8] sm:$0x1] }
 0x161   :  { %v2405_v50 = vpop.f32.mrb[6].mxu1  ;;  %2582 = vmatpush3.bf16.msra.mxu0 %v2579_v42  ;;  %p2795_p2 = pnand %p2794_p1, %p2788_p12 }
 0x162   :  { %v1172_v51 = vadd.f32 %v2405_v50, %v3146_v2  ;;  %v1166_v52 = vpop.f32.mrb[7].mxu1  ;;  %2584 = vmatprep.subr.bf16.mxu0 %v2583_v4 }
 0x163   :  { %v1167_v54 = vadd.f32 %v3146_v2, %v1166_v52 }
 0x164   :  { %v1176_v59 = vmax.f32 %v1172_v51, 0.0 }
 0x165   :  { %v1175_v58 = vmax.f32 %v1167_v54, 0.0  ;;  %2586 = vmatpush3.bf16.msra.mxu0 %v2583_v4  ;;  %v2069_v4 = vlaneseq }
 0x166   :  { %2596 = vmatprep.subr.bf16.mxu0 %v2595_v53 }
 0x167   :  { %2414 = vmatprep.mubr.msk.f32.mxu0 %vm184_vm7, %v1175_v58  ;;  %v2070_v48 = vshrl.u32 %v2069_v4, 7 }
 0x168   :  { %2415 = vmatmul.mubr.msk.f32.vlgmr.msra.gmra.mrb[2].mxu0 %vm184_vm7, %v1176_v59 }
 0x169   :  { %v2427_v62 = vpop.f32.mrb[8].mxu1  ;;  %2598 = vmatpush3.bf16.msra.mxu0 %v2595_v53  ;;  %v2071_v49 = vsub.s32 0, %v2070_v48 }
 0x16a   :  { %v1401_v63 = vadd.f32 %v2427_v62, %v3146_v2  ;;  %v1395_v0 = vpop.f32.mrb[9].mxu1  ;;  %2600 = vmatprep.subr.bf16.mxu0 %v2599_v8 }
 0x16b   :  { %v1396_v3 = vadd.f32 %v3146_v2, %v1395_v0 }
 0x16c   :  { %v1405_v9 = vmax.f32 %v1401_v63, 0.0 }
 0x16d   :  { %v1404_v7 = vmax.f32 %v1396_v3, 0.0  ;;  %2602 = vmatpush3.bf16.msra.mxu0 %v2599_v8 }
 0x16e   :  { %2612 = vmatprep.subr.bf16.mxu0 %v2611_v1 }
 0x16f   :  { %2436 = vmatprep.mubr.msk.f32.mxu0 %vm184_vm7, %v1404_v7 }
 0x170   :  { %2437 = vmatmul.mubr.msk.f32.vlgmr.msra.gmra.mrb[2].mxu0 %vm184_vm7, %v1405_v9 }
 0x171   :  { %v2449_v13 = vpop.f32.mrb[10].mxu1  ;;  %2614 = vmatpush3.bf16.msra.mxu0 %v2611_v1 }
 0x172   :  { %v1630_v14 = vadd.f32 %v2449_v13, %v3146_v2  ;;  %v1624_v15 = vpop.f32.mrb[11].mxu1  ;;  %2616 = vmatprep.subr.bf16.mxu0 %v2615_v10 }
 0x173   :  { %v1625_v17 = vadd.f32 %v3146_v2, %v1624_v15 }
 0x174   :  { %v1634_v21 = vmax.f32 %v1630_v14, 0.0 }
 0x175   :  { %v1633_v20 = vmax.f32 %v1625_v17, 0.0  ;;  %2618 = vmatpush3.bf16.msra.mxu0 %v2615_v10 }
 0x176   :  { %2628 = vmatprep.subr.bf16.mxu0 %v2627_v16 }
 0x177   :  { %2458 = vmatprep.mubr.msk.f32.mxu0 %vm184_vm7, %v1633_v20 }
 0x178   :  { %2459 = vmatmul.mubr.msk.f32.vlgmr.msra.gmra.mrb[2].mxu0 %vm184_vm7, %v1634_v21 }
 0x179   :  { %v2471_v23 = vpop.f32.mrb[12].mxu1  ;;  %2630 = vmatpush3.bf16.msra.mxu0 %v2627_v16 }
 0x17a   :  { %v1859_v24 = vadd.f32 %v2471_v23, %v3146_v2  ;;  %v1853_v25 = vpop.f32.mrb[13].mxu1  ;;  %2632 = vmatprep.subr.bf16.mxu0 %v2631_v22 }
 0x17b   :  { %v1854_v55 = vadd.f32 %v3146_v2, %v1853_v25 }
 0x17c   :  { %v1863_v27 = vmax.f32 %v1859_v24, 0.0 }
 0x17d   :  { %v1862_v26 = vmax.f32 %v1854_v55, 0.0  ;;  %2634 = vmatpush3.bf16.msra.mxu0 %v2631_v22 }
 0x17e   :  { %2502 = vmatprep.subr.mxu0 %v2824_v37 }
 0x17f   :  { %2480 = vmatprep.mubr.msk.f32.mxu0 %vm184_vm7, %v1862_v26 }
 0x180   :  { %2481 = vmatmul.mubr.msk.f32.vlgmr.msra.gmra.mrb[2].mxu0 %vm184_vm7, %v1863_v27 }
 0x181   :  { %2504 = vmatprep.mubr.msk.f32.mxu0 %vm2825_vm9, %v2824_v37 }
 0x1db   :  { %v2067_v50 = vpop.permute.xlu0 %2066 }
 0x1dc   :  { %v2072_v51 = vrot.slane %v2067_v50, %v2071_v49 }
 0x253   :  { %v2482_v32 = vpop.f32.mrb[2].mxu0 }
 0x254   :  { %v1960_v33 = vadd.f32 %v2482_v32, %v2195_v31  ;;  %v1941_v34 = vpop.f32.mrb[3].mxu0 }
 0x255   :  { %v1959_v2 = vadd.f32 %v2195_v31, %v1941_v34 }
 0x256   :  { %v1962_v36 = vmax.f32 %v1960_v33, 0.0 }
 0x257   :  { %v1961_v35 = vmax.f32 %v1959_v2, 0.0 }
 0x259   :  { %2499 = vmatprep.mubr.msk.f32.mxu1 %vm1978_vm8, %v1961_v35 }
 0x25a   :  { %2500 = vmatmul.mubr.msk.f32.vlgmr.msra.gmra.mrb[14].mxu1 %vm1978_vm8, %v1962_v36 }
 0x32d   :  { %v2501_v41 = vpop.f32.mrb[14].mxu1 }
 0x32e   :  { %v2057_v42 = vadd.f32 %v2501_v41, %v2196_v40  ;;  %v2051_v43 = vpop.f32.mrb[15].mxu1 }
 0x32f   :  { %v2052_v44 = vadd.f32 %v2196_v40, %v2051_v43 }
 0x331   :  { %v2060_v45 = vsub.f32 %v2052_v44, %v2057_v42 }
 0x333   :  { %v2061_v46 = vand.u32 2147483647, %v2060_v45 }
 0x335   :  { %2503 = vmatpush3.xpose.msra.mxu0 %v2061_v46 }
 0x338   :  { %2505 = vmatmul.mubr.f32.vlgmr.msra.gmra.mrb[4].mxu0 %v2062_v47 }
 0x40b   :  { %v2139_v52 = vpop.f32.mrb[4].mxu0 }
 0x40c   :  { %v2140_v53 = vadd.f32 %v2139_v52, %v2072_v51  ;;  %v2506_v54 = vpop.f32.mrb[5].mxu0 }
 0x40e   :  { %2144 = vst.msk [vmem:[#allocation12] sm:$0x1] %vm2143_vm10, %v2140_v53 }
 0x40f   :  { %2798 = shalt.err (!%p2795_p2)
}
 0x410   :  { %s2799_s16 = scalar_lea.hbm %s3211_s10, 16 }
 0x411   :  { %p2800_p3 = scmp.ne.s32.totalorder %s3211_s10, %s2799_s16  ;;  %p2803_p4 = scmp.lt.u32.totalorder %s2799_s16, %s3211_s10 }
 0x413   :  { %p2805_p5 = pnand %p2803_p4, %p2800_p3 }
 0x415   :  { %2808 = shalt.err (!%p2805_p5)
}
 0x416   :  { %2154 = dma.vmem_to_hbm [thread:$0]  %s2152_s17, 16, %s3211_s10, [#allocation5]  }
 0x417   :  { %2815 = dma.done.wait [#allocation5], 16  }
 0x418   :  { %2816 = vsyncadd [#allocation5], 4294967280 }
 0x419   :  { %2158 = vsyncpa [#allocation4], 1 }
 0x41a   :  { %2159 = vsyncpa [#allocation7], 1 }
 0x41b   :  { %2160 = vsyncpa [#allocation10], 1 }
 0x41c   :  { %2161 = vsyncpa [#allocation5], 1 }

</bundles_post_ra>
